<compile_context>
chip_gen: v7x
topology: tpu7x:2x2x1
jax: 0.10.0
libtpu: 0.0.40
codegen_flags: <defaults>
</compile_context>

<pallas_src>
import numpy as np
import jax
import jax.numpy as jnp
from jax.experimental import pallas as pl
from jax.experimental.pallas import tpu as pltpu


def _round_up(x, m):
    return ((x + m - 1) // m) * m


def init_params(key, n_tokens, hid_size):
    ks = jax.random.split(key, 8)
    s = 0.1
    return {
        "embedding": jax.random.normal(ks[0], (n_tokens, hid_size), jnp.float32) * s,
        "w_ih": jax.random.normal(ks[1], (3 * hid_size, hid_size), jnp.float32) * s,
        "w_hh": jax.random.normal(ks[2], (3 * hid_size, hid_size), jnp.float32) * s,
        "b_ih": jax.random.normal(ks[3], (3 * hid_size,), jnp.float32) * s,
        "b_hh": jax.random.normal(ks[4], (3 * hid_size,), jnp.float32) * s,
        "w1": jax.random.normal(ks[5], (hid_size, hid_size), jnp.float32) * s,
        "b1": jnp.zeros((hid_size,), jnp.float32),
        "bn_gamma": jnp.ones((hid_size,), jnp.float32),
        "bn_beta": jnp.zeros((hid_size,), jnp.float32),
        "bn_mean": jnp.zeros((hid_size,), jnp.float32),
        "bn_var": jnp.ones((hid_size,), jnp.float32),
        "w2": jax.random.normal(ks[6], (5, hid_size), jnp.float32) * s,
        "b2": jnp.zeros((5,), jnp.float32),
    }


def gru_predictor_forward(tokens, params, *, t_tile=32, matmul_dtype=jnp.bfloat16):
    B, T = tokens.shape
    n_tokens, H = params["embedding"].shape
    md = matmul_dtype
    f32 = jnp.float32

    # ---- time tiling: pad T to a multiple of t_tile; padded steps are masked in-kernel ----
    t_tile = min(int(t_tile), _round_up(T, 8))           # t_tile is a multiple of 8
    T_pad = _round_up(T, t_tile)
    n_blk = T_pad // t_tile
    Tt = t_tile
    has_pad = (T_pad != T)

    # time-major token ids (T_pad*B, 1) int32 — the only pipelined HBM stream.
    tok_tm = jnp.transpose(tokens.astype(jnp.int32))                      # (T, B)
    tok_tm = jnp.pad(tok_tm, ((0, T_pad - T), (0, 0)))                    # pad ids = 0 (masked)
    tok_col = tok_tm.reshape(T_pad * B, 1)

    # ---- fold embedding lookup + GRU input projection into one (n_tokens, 3H) gate table ----
    w_ih, w_hh = params["w_ih"], params["w_hh"]                           # (3H, H), gate order r,z,n
    n_tok_pad = _round_up(n_tokens, 128)                                  # lane-dense one-hot K dim
    wg = jnp.dot(params["embedding"], w_ih.T)                             # (n_tokens, 3H)
    wg = jnp.pad(wg, ((0, n_tok_pad - n_tokens), (0, 0)))

    b_ih, b_hh = params["b_ih"], params["b_hh"]
    b_i = jnp.concatenate([b_ih[0:H] + b_hh[0:H],                         # r/z biases pre-combined
                           b_ih[H:2 * H] + b_hh[H:2 * H],
                           b_ih[2 * H:3 * H]]).reshape(1, 3 * H)
    b_hn = b_hh[2 * H:3 * H].reshape(1, H)
    whh = w_hh.T                                                          # (H, 3H), fused gates

    # ---- fold eval-mode BatchNorm1d into Linear #1 ----
    eps = 1e-5
    scale = params["bn_gamma"] * jax.lax.rsqrt(params["bn_var"] + eps)
    w1p = params["w1"].T * scale[None, :]                                 # (H, H)
    b1p = ((params["b1"] - params["bn_mean"]) * scale + params["bn_beta"]).reshape(1, H)
    n_cls = params["w2"].shape[0]
    w2 = params["w2"].T                                                   # (H, n_cls)
    b2 = params["b2"].reshape(1, n_cls)

    args = (tok_col,
            wg.astype(md), b_i.astype(f32),
            whh.astype(f32), b_hn.astype(f32),                            # recurrence stays f32
            w1p.astype(md), b1p.astype(f32),
            w2.astype(md), b2.astype(f32))

    def kernel(tok_ref, wg_ref, bi_ref, whh_ref, bhn_ref,
               w1_ref, b1_ref, w2_ref, b2_ref, out_ref, h_ref):

        @pl.when(pl.program_id(0) == 0)
        def _():
            h_ref[...] = jnp.zeros_like(h_ref)

        # Fused embedding lookup + input projection for all 3 gates of the whole tile:
        # one-hot(ids) @ (emb @ W_ih^T)  -> (Tt*B, 3H), single MXU pass, no gather.
        ids = tok_ref[...]                                                # (Tt*B, 1) int32
        onehot = (jax.lax.broadcasted_iota(jnp.int32, (Tt * B, n_tok_pad), 1)
                  == ids).astype(wg_ref.dtype)
        gi = jnp.dot(onehot, wg_ref[...], preferred_element_type=jnp.float32) + bi_ref[...]

        whh_v = whh_ref[...]                                              # (H, 3H) f32
        bhn_v = bhn_ref[...]                                              # (1, H) f32

        h = h_ref[...]                                                    # (B, H) f32
        for t in range(Tt):           # static unroll; only h @ W_hh sits on the serial path
            lo = t * B
            gh = jnp.dot(h, whh_v, preferred_element_type=jnp.float32)    # (B, 3H) fused gates
            gi_t = gi[lo:lo + B]
            r = jax.nn.sigmoid(gi_t[:, 0:H] + gh[:, 0:H])
            z = jax.nn.sigmoid(gi_t[:, H:2 * H] + gh[:, H:2 * H])
            n = jnp.tanh(gi_t[:, 2 * H:3 * H] + r * (gh[:, 2 * H:3 * H] + bhn_v))
            h_new = (1.0 - z) * n + z * h
            if has_pad:
                valid = (pl.program_id(0) * Tt + t) < T                   # mask padded timesteps
                h_new = jnp.where(valid, h_new, h)
            h = h_new
        h_ref[...] = h

        @pl.when(pl.program_id(0) == pl.num_programs(0) - 1)
        def _():
            # Dropout(p=0.25) = identity in eval mode; ELU(alpha=1), inf-safe form.
            hf = jnp.where(h > 0.0, h, jnp.exp(jnp.minimum(h, 0.0)) - 1.0)
            # Linear(H, H) with eval-mode BatchNorm1d folded into w1'/b1'.
            y = jnp.dot(hf.astype(w1_ref.dtype), w1_ref[...],
                        preferred_element_type=jnp.float32) + b1_ref[...]
            y = jnp.where(y > 0.0, y, 0.01 * y)                           # LeakyReLU(0.01)
            logits = jnp.dot(y.astype(w2_ref.dtype), w2_ref[...],
                             preferred_element_type=jnp.float32) + b2_ref[...]
            m = jnp.max(logits, axis=-1, keepdims=True)
            e = jnp.exp(logits - m)
            s = jnp.sum(e, axis=-1, keepdims=True)
            out_ref[...] = e * pl.reciprocal(s, approx=True)              # EUP slot, free

    def const_spec(a):
        return pl.BlockSpec(a.shape, lambda i: (0, 0))                    # grid-invariant

    grid_spec = pltpu.PrefetchScalarGridSpec(
        num_scalar_prefetch=0,
        grid=(n_blk,),
        in_specs=[pl.BlockSpec((Tt * B, 1), lambda i: (i, 0))]            # pipelined token tiles
                 + [const_spec(a) for a in args[1:]],
        out_specs=pl.BlockSpec((B, n_cls), lambda i: (0, 0)),
        scratch_shapes=[pltpu.VMEM((B, H), jnp.float32)],                 # carried hidden state
    )

    return pl.pallas_call(
        kernel,
        out_shape=jax.ShapeDtypeStruct((B, n_cls), jnp.float32),
        grid_spec=grid_spec,
        compiler_params=pltpu.CompilerParams(
            dimension_semantics=("arbitrary",),                           # sequential time carry
            vmem_limit_bytes=32 * 1024 * 1024,                            # safe on v5e/v6e/v7x
        ),
    )(*args)


def reference_forward(tokens, params):
    """Pure-JAX reference mirroring the PyTorch forward (eval mode)."""
    H = params["embedding"].shape[1]
    emb = params["embedding"][tokens]                       # (B, T, H)
    B, T, _ = emb.shape
    wih_t = params["w_ih"].T
    whh_t = params["w_hh"].T
    bih, bhh = params["b_ih"], params["b_hh"]

    def step(h, x_t):
        gi = jnp.dot(x_t, wih_t) + bih
        gh = jnp.dot(h, whh_t) + bhh
        r = jax.nn.sigmoid(gi[:, :H] + gh[:, :H])
        z = jax.nn.sigmoid(gi[:, H:2 * H] + gh[:, H:2 * H])
        n = jnp.tanh(gi[:, 2 * H:] + r * gh[:, 2 * H:])
        return (1.0 - z) * n + z * h, None

    h, _ = jax.lax.scan(step, jnp.zeros((B, H), jnp.float32),
                        jnp.transpose(emb, (1, 0, 2)))
    h = jnp.where(h > 0, h, jnp.exp(jnp.minimum(h, 0.0)) - 1.0)           # Dropout=id, ELU
    y = jnp.dot(h, params["w1"].T) + params["b1"]
    y = (y - params["bn_mean"]) / jnp.sqrt(params["bn_var"] + 1e-5)
    y = y * params["bn_gamma"] + params["bn_beta"]
    y = jnp.where(y > 0, y, 0.01 * y)                                     # LeakyReLU
    logits = jnp.dot(y, params["w2"].T) + params["b2"]
    return jax.nn.softmax(logits, axis=-1)


if __name__ == "__main__":
    n_tokens, hid_size = 50, 32
    B, T = 8, 16

    key = jax.random.PRNGKey(0)
    pkey, tkey = jax.random.split(key)
    params = init_params(pkey, n_tokens, hid_size)
    tokens = jax.random.randint(tkey, (B, T), 0, n_tokens, dtype=jnp.int32)

    ref = jax.block_until_ready(reference_forward(tokens, params))

    # f32 path: numerically faithful to the PyTorch eval-mode forward
    # (approx-reciprocal softmax and weight pre-folding introduce only tiny deltas).
    out_f32 = jax.block_until_ready(
        gru_predictor_forward(tokens, params, matmul_dtype=jnp.float32))
    assert out_f32.shape == (B, 5)
    assert np.allclose(np.asarray(out_f32), np.asarray(ref), rtol=5e-3, atol=5e-4)

    # bf16 MXU fast path (f32 recurrence, f32 accumulation, f32 elementwise math).
    out_bf16 = jax.block_until_ready(
        gru_predictor_forward(tokens, params, matmul_dtype=jnp.bfloat16))
    assert out_bf16.shape == (B, 5)
    assert np.allclose(np.asarray(out_bf16), np.asarray(ref), rtol=5e-2, atol=2e-2)
    assert np.allclose(np.asarray(out_bf16).sum(axis=-1), 1.0, atol=5e-3)

    # Ragged / multi-tile path: T not a multiple of t_tile -> padded time + masked carry
    # across two pipelined tiles.
    tokens2 = jax.random.randint(jax.random.PRNGKey(1), (B, 12), 0, n_tokens, dtype=jnp.int32)
    ref2 = jax.block_until_ready(reference_forward(tokens2, params))
    out2 = jax.block_until_ready(
        gru_predictor_forward(tokens2, params, t_tile=8, matmul_dtype=jnp.float32))
    assert np.allclose(np.asarray(out2), np.asarray(ref2), rtol=5e-3, atol=5e-4)

    print("KERNEL_OK")
</pallas_src>

<mosaic_0001>
module attributes {stable_mosaic.version = 11 : i64} {
  func.func @kernel(%arg0: i32, %arg1: memref<128x1xi32, #tpu.memory_space<vmem>>, %arg2: memref<128x96xf32, #tpu.memory_space<vmem>>, %arg3: memref<1x96xf32, #tpu.memory_space<vmem>>, %arg4: memref<32x96xf32, #tpu.memory_space<vmem>>, %arg5: memref<1x32xf32, #tpu.memory_space<vmem>>, %arg6: memref<32x32xf32, #tpu.memory_space<vmem>>, %arg7: memref<1x32xf32, #tpu.memory_space<vmem>>, %arg8: memref<32x5xf32, #tpu.memory_space<vmem>>, %arg9: memref<1x5xf32, #tpu.memory_space<vmem>>, %arg10: memref<8x5xf32, #tpu.memory_space<vmem>>, %arg11: memref<8x32xf32, #tpu.memory_space<vmem>>) attributes {dimension_semantics = [#tpu.dimension_semantics<arbitrary>], iteration_bounds = array<i64: 1>, scalar_prefetch = 0 : i64, scratch_operands = 1 : i64, tpu.core_type = #tpu.core_type<tc>, window_params = [{transform_indices = @transform_0, window_bounds = array<i64: 128, 1>}, {pipeline_mode = #tpu.pipeline_mode<synchronous>, transform_indices = @transform_1, window_bounds = array<i64: 128, 96>}, {pipeline_mode = #tpu.pipeline_mode<synchronous>, transform_indices = @transform_2, window_bounds = array<i64: 1, 96>}, {pipeline_mode = #tpu.pipeline_mode<synchronous>, transform_indices = @transform_3, window_bounds = array<i64: 32, 96>}, {pipeline_mode = #tpu.pipeline_mode<synchronous>, transform_indices = @transform_4, window_bounds = array<i64: 1, 32>}, {pipeline_mode = #tpu.pipeline_mode<synchronous>, transform_indices = @transform_5, window_bounds = array<i64: 32, 32>}, {pipeline_mode = #tpu.pipeline_mode<synchronous>, transform_indices = @transform_6, window_bounds = array<i64: 1, 32>}, {pipeline_mode = #tpu.pipeline_mode<synchronous>, transform_indices = @transform_7, window_bounds = array<i64: 32, 5>}, {pipeline_mode = #tpu.pipeline_mode<synchronous>, transform_indices = @transform_8, window_bounds = array<i64: 1, 5>}, {pipeline_mode = #tpu.pipeline_mode<synchronous>, transform_indices = @transform_9, window_bounds = array<i64: 8, 5>}]} {
    %c0_i32 = arith.constant 0 : i32
    %0 = arith.cmpi eq, %arg0, %c0_i32 : i32
    %1 = arith.extui %0 : i1 to i32
    %c0_i32_0 = arith.constant 0 : i32
    %2 = arith.cmpi ne, %1, %c0_i32_0 : i32
    scf.if %2 {
      %cst_80 = arith.constant 0.000000e+00 : f32
      %501 = vector.broadcast %cst_80 : f32 to vector<8x32xf32>
      %c0_81 = arith.constant 0 : index
      %c0_82 = arith.constant 0 : index
      %502 = vector.load %arg11[%c0_81, %c0_82] : memref<8x32xf32, #tpu.memory_space<vmem>>, vector<8x32xf32>
      tpu.vector_store %arg11[%c0_81, %c0_82], %501 {strides = array<i32>} : memref<8x32xf32, #tpu.memory_space<vmem>>, vector<8x32xf32>,
    } else {
    }
    %c0 = arith.constant 0 : index
    %c0_1 = arith.constant 0 : index
    %3 = vector.load %arg1[%c0, %c0_1] : memref<128x1xi32, #tpu.memory_space<vmem>>, vector<128x1xi32>
    %4 = tpu.iota {dimensions = array<i32: 1>} : vector<128x128xi32>
    %5 = vector.broadcast %3 : vector<128x1xi32> to vector<128x128xi32>
    %6 = arith.cmpi eq, %4, %5 : vector<128x128xi32>
    %7 = arith.extui %6 : vector<128x128xi1> to vector<128x128xi32>
    %8 = arith.sitofp %7 : vector<128x128xi32> to vector<128x128xf32>
    %c0_2 = arith.constant 0 : index
    %c0_3 = arith.constant 0 : index
    %9 = vector.load %arg2[%c0_2, %c0_3] : memref<128x96xf32, #tpu.memory_space<vmem>>, vector<128x96xf32>
    %cst = arith.constant dense<0.000000e+00> : vector<128x96xf32>
    %10 = tpu.matmul %8, %9, %cst {dimension_numbers = #tpu.dot_dimension_numbers<[1], [0], [0], [1], [0, 0, 1, 1], [], []>} : vector<128x128xf32>, vector<128x96xf32>, vector<128x96xf32> -> vector<128x96xf32>
    %c0_4 = arith.constant 0 : index
    %c0_5 = arith.constant 0 : index
    %11 = vector.load %arg3[%c0_4, %c0_5] : memref<1x96xf32, #tpu.memory_space<vmem>>, vector<1x96xf32>
    %12 = vector.broadcast %11 : vector<1x96xf32> to vector<128x96xf32>
    %13 = arith.addf %10, %12 : vector<128x96xf32>
    %c0_6 = arith.constant 0 : index
    %c0_7 = arith.constant 0 : index
    %14 = vector.load %arg4[%c0_6, %c0_7] : memref<32x96xf32, #tpu.memory_space<vmem>>, vector<32x96xf32>
    %c0_8 = arith.constant 0 : index
    %c0_9 = arith.constant 0 : index
    %15 = vector.load %arg5[%c0_8, %c0_9] : memref<1x32xf32, #tpu.memory_space<vmem>>, vector<1x32xf32>
    %c0_10 = arith.constant 0 : index
    %c0_11 = arith.constant 0 : index
    %16 = vector.load %arg11[%c0_10, %c0_11] : memref<8x32xf32, #tpu.memory_space<vmem>>, vector<8x32xf32>
    %cst_12 = arith.constant dense<0.000000e+00> : vector<8x96xf32>
    %17 = tpu.matmul %16, %14, %cst_12 {dimension_numbers = #tpu.dot_dimension_numbers<[1], [0], [0], [1], [0, 0, 1, 1], [], []>} : vector<8x32xf32>, vector<32x96xf32>, vector<8x96xf32> -> vector<8x96xf32>
    %18 = vector.extract_strided_slice %13 {offsets = [0, 0], sizes = [8, 96], strides = [1, 1]} : vector<128x96xf32> to vector<8x96xf32>
    %19 = vector.extract_strided_slice %18 {offsets = [0, 0], sizes = [8, 32], strides = [1, 1]} : vector<8x96xf32> to vector<8x32xf32>
    %20 = vector.extract_strided_slice %17 {offsets = [0, 0], sizes = [8, 32], strides = [1, 1]} : vector<8x96xf32> to vector<8x32xf32>
    %21 = arith.addf %19, %20 : vector<8x32xf32>
    %22 = arith.negf %21 : vector<8x32xf32>
    %23 = math.exp %22 : vector<8x32xf32>
    %cst_13 = arith.constant 1.000000e+00 : f32
    %24 = vector.broadcast %cst_13 : f32 to vector<8x32xf32>
    %25 = arith.addf %24, %23 : vector<8x32xf32>
    %26 = arith.divf %24, %25 : vector<8x32xf32>
    %27 = vector.extract_strided_slice %18 {offsets = [0, 32], sizes = [8, 32], strides = [1, 1]} : vector<8x96xf32> to vector<8x32xf32>
    %28 = vector.extract_strided_slice %17 {offsets = [0, 32], sizes = [8, 32], strides = [1, 1]} : vector<8x96xf32> to vector<8x32xf32>
    %29 = arith.addf %27, %28 : vector<8x32xf32>
    %30 = arith.negf %29 : vector<8x32xf32>
    %31 = math.exp %30 : vector<8x32xf32>
    %cst_14 = arith.constant 1.000000e+00 : f32
    %32 = vector.broadcast %cst_14 : f32 to vector<8x32xf32>
    %33 = arith.addf %32, %31 : vector<8x32xf32>
    %34 = arith.divf %32, %33 : vector<8x32xf32>
    %35 = vector.extract_strided_slice %18 {offsets = [0, 64], sizes = [8, 32], strides = [1, 1]} : vector<8x96xf32> to vector<8x32xf32>
    %36 = vector.extract_strided_slice %17 {offsets = [0, 64], sizes = [8, 32], strides = [1, 1]} : vector<8x96xf32> to vector<8x32xf32>
    %37 = vector.broadcast %15 : vector<1x32xf32> to vector<8x32xf32>
    %38 = arith.addf %36, %37 : vector<8x32xf32>
    %39 = arith.mulf %26, %38 : vector<8x32xf32>
    %40 = arith.addf %35, %39 : vector<8x32xf32>
    %41 = math.tanh %40 : vector<8x32xf32>
    %cst_15 = arith.constant 1.000000e+00 : f32
    %42 = vector.broadcast %cst_15 : f32 to vector<8x32xf32>
    %43 = arith.subf %42, %34 : vector<8x32xf32>
    %44 = arith.mulf %43, %41 : vector<8x32xf32>
    %45 = arith.mulf %34, %16 : vector<8x32xf32>
    %46 = arith.addf %44, %45 : vector<8x32xf32>
    %cst_16 = arith.constant dense<0.000000e+00> : vector<8x96xf32>
    %47 = tpu.matmul %46, %14, %cst_16 {dimension_numbers = #tpu.dot_dimension_numbers<[1], [0], [0], [1], [0, 0, 1, 1], [], []>} : vector<8x32xf32>, vector<32x96xf32>, vector<8x96xf32> -> vector<8x96xf32>
    %48 = vector.extract_strided_slice %13 {offsets = [8, 0], sizes = [8, 96], strides = [1, 1]} : vector<128x96xf32> to vector<8x96xf32>
    %49 = vector.extract_strided_slice %48 {offsets = [0, 0], sizes = [8, 32], strides = [1, 1]} : vector<8x96xf32> to vector<8x32xf32>
    %50 = vector.extract_strided_slice %47 {offsets = [0, 0], sizes = [8, 32], strides = [1, 1]} : vector<8x96xf32> to vector<8x32xf32>
    %51 = arith.addf %49, %50 : vector<8x32xf32>
    %52 = arith.negf %51 : vector<8x32xf32>
    %53 = math.exp %52 : vector<8x32xf32>
    %cst_17 = arith.constant 1.000000e+00 : f32
    %54 = vector.broadcast %cst_17 : f32 to vector<8x32xf32>
    %55 = arith.addf %54, %53 : vector<8x32xf32>
    %56 = arith.divf %54, %55 : vector<8x32xf32>
    %57 = vector.extract_strided_slice %48 {offsets = [0, 32], sizes = [8, 32], strides = [1, 1]} : vector<8x96xf32> to vector<8x32xf32>
    %58 = vector.extract_strided_slice %47 {offsets = [0, 32], sizes = [8, 32], strides = [1, 1]} : vector<8x96xf32> to vector<8x32xf32>
    %59 = arith.addf %57, %58 : vector<8x32xf32>
    %60 = arith.negf %59 : vector<8x32xf32>
    %61 = math.exp %60 : vector<8x32xf32>
    %cst_18 = arith.constant 1.000000e+00 : f32
    %62 = vector.broadcast %cst_18 : f32 to vector<8x32xf32>
    %63 = arith.addf %62, %61 : vector<8x32xf32>
    %64 = arith.divf %62, %63 : vector<8x32xf32>
    %65 = vector.extract_strided_slice %48 {offsets = [0, 64], sizes = [8, 32], strides = [1, 1]} : vector<8x96xf32> to vector<8x32xf32>
    %66 = vector.extract_strided_slice %47 {offsets = [0, 64], sizes = [8, 32], strides = [1, 1]} : vector<8x96xf32> to vector<8x32xf32>
    %67 = vector.broadcast %15 : vector<1x32xf32> to vector<8x32xf32>
    %68 = arith.addf %66, %67 : vector<8x32xf32>
    %69 = arith.mulf %56, %68 : vector<8x32xf32>
    %70 = arith.addf %65, %69 : vector<8x32xf32>
    %71 = math.tanh %70 : vector<8x32xf32>
    %cst_19 = arith.constant 1.000000e+00 : f32
    %72 = vector.broadcast %cst_19 : f32 to vector<8x32xf32>
    %73 = arith.subf %72, %64 : vector<8x32xf32>
    %74 = arith.mulf %73, %71 : vector<8x32xf32>
    %75 = arith.mulf %64, %46 : vector<8x32xf32>
    %76 = arith.addf %74, %75 : vector<8x32xf32>
    %cst_20 = arith.constant dense<0.000000e+00> : vector<8x96xf32>
    %77 = tpu.matmul %76, %14, %cst_20 {dimension_numbers = #tpu.dot_dimension_numbers<[1], [0], [0], [1], [0, 0, 1, 1], [], []>} : vector<8x32xf32>, vector<32x96xf32>, vector<8x96xf32> -> vector<8x96xf32>
    %78 = vector.extract_strided_slice %13 {offsets = [16, 0], sizes = [8, 96], strides = [1, 1]} : vector<128x96xf32> to vector<8x96xf32>
    %79 = vector.extract_strided_slice %78 {offsets = [0, 0], sizes = [8, 32], strides = [1, 1]} : vector<8x96xf32> to vector<8x32xf32>
    %80 = vector.extract_strided_slice %77 {offsets = [0, 0], sizes = [8, 32], strides = [1, 1]} : vector<8x96xf32> to vector<8x32xf32>
    %81 = arith.addf %79, %80 : vector<8x32xf32>
    %82 = arith.negf %81 : vector<8x32xf32>
    %83 = math.exp %82 : vector<8x32xf32>
    %cst_21 = arith.constant 1.000000e+00 : f32
    %84 = vector.broadcast %cst_21 : f32 to vector<8x32xf32>
    %85 = arith.addf %84, %83 : vector<8x32xf32>
    %86 = arith.divf %84, %85 : vector<8x32xf32>
    %87 = vector.extract_strided_slice %78 {offsets = [0, 32], sizes = [8, 32], strides = [1, 1]} : vector<8x96xf32> to vector<8x32xf32>
    %88 = vector.extract_strided_slice %77 {offsets = [0, 32], sizes = [8, 32], strides = [1, 1]} : vector<8x96xf32> to vector<8x32xf32>
    %89 = arith.addf %87, %88 : vector<8x32xf32>
    %90 = arith.negf %89 : vector<8x32xf32>
    %91 = math.exp %90 : vector<8x32xf32>
    %cst_22 = arith.constant 1.000000e+00 : f32
    %92 = vector.broadcast %cst_22 : f32 to vector<8x32xf32>
    %93 = arith.addf %92, %91 : vector<8x32xf32>
    %94 = arith.divf %92, %93 : vector<8x32xf32>
    %95 = vector.extract_strided_slice %78 {offsets = [0, 64], sizes = [8, 32], strides = [1, 1]} : vector<8x96xf32> to vector<8x32xf32>
    %96 = vector.extract_strided_slice %77 {offsets = [0, 64], sizes = [8, 32], strides = [1, 1]} : vector<8x96xf32> to vector<8x32xf32>
    %97 = vector.broadcast %15 : vector<1x32xf32> to vector<8x32xf32>
    %98 = arith.addf %96, %97 : vector<8x32xf32>
    %99 = arith.mulf %86, %98 : vector<8x32xf32>
    %100 = arith.addf %95, %99 : vector<8x32xf32>
    %101 = math.tanh %100 : vector<8x32xf32>
    %cst_23 = arith.constant 1.000000e+00 : f32
    %102 = vector.broadcast %cst_23 : f32 to vector<8x32xf32>
    %103 = arith.subf %102, %94 : vector<8x32xf32>
    %104 = arith.mulf %103, %101 : vector<8x32xf32>
    %105 = arith.mulf %94, %76 : vector<8x32xf32>
    %106 = arith.addf %104, %105 : vector<8x32xf32>
    %cst_24 = arith.constant dense<0.000000e+00> : vector<8x96xf32>
    %107 = tpu.matmul %106, %14, %cst_24 {dimension_numbers = #tpu.dot_dimension_numbers<[1], [0], [0], [1], [0, 0, 1, 1], [], []>} : vector<8x32xf32>, vector<32x96xf32>, vector<8x96xf32> -> vector<8x96xf32>
    %108 = vector.extract_strided_slice %13 {offsets = [24, 0], sizes = [8, 96], strides = [1, 1]} : vector<128x96xf32> to vector<8x96xf32>
    %109 = vector.extract_strided_slice %108 {offsets = [0, 0], sizes = [8, 32], strides = [1, 1]} : vector<8x96xf32> to vector<8x32xf32>
    %110 = vector.extract_strided_slice %107 {offsets = [0, 0], sizes = [8, 32], strides = [1, 1]} : vector<8x96xf32> to vector<8x32xf32>
    %111 = arith.addf %109, %110 : vector<8x32xf32>
    %112 = arith.negf %111 : vector<8x32xf32>
    %113 = math.exp %112 : vector<8x32xf32>
    %cst_25 = arith.constant 1.000000e+00 : f32
    %114 = vector.broadcast %cst_25 : f32 to vector<8x32xf32>
    %115 = arith.addf %114, %113 : vector<8x32xf32>
    %116 = arith.divf %114, %115 : vector<8x32xf32>
    %117 = vector.extract_strided_slice %108 {offsets = [0, 32], sizes = [8, 32], strides = [1, 1]} : vector<8x96xf32> to vector<8x32xf32>
    %118 = vector.extract_strided_slice %107 {offsets = [0, 32], sizes = [8, 32], strides = [1, 1]} : vector<8x96xf32> to vector<8x32xf32>
    %119 = arith.addf %117, %118 : vector<8x32xf32>
    %120 = arith.negf %119 : vector<8x32xf32>
    %121 = math.exp %120 : vector<8x32xf32>
    %cst_26 = arith.constant 1.000000e+00 : f32
    %122 = vector.broadcast %cst_26 : f32 to vector<8x32xf32>
    %123 = arith.addf %122, %121 : vector<8x32xf32>
    %124 = arith.divf %122, %123 : vector<8x32xf32>
    %125 = vector.extract_strided_slice %108 {offsets = [0, 64], sizes = [8, 32], strides = [1, 1]} : vector<8x96xf32> to vector<8x32xf32>
    %126 = vector.extract_strided_slice %107 {offsets = [0, 64], sizes = [8, 32], strides = [1, 1]} : vector<8x96xf32> to vector<8x32xf32>
    %127 = vector.broadcast %15 : vector<1x32xf32> to vector<8x32xf32>
    %128 = arith.addf %126, %127 : vector<8x32xf32>
    %129 = arith.mulf %116, %128 : vector<8x32xf32>
    %130 = arith.addf %125, %129 : vector<8x32xf32>
    %131 = math.tanh %130 : vector<8x32xf32>
    %cst_27 = arith.constant 1.000000e+00 : f32
    %132 = vector.broadcast %cst_27 : f32 to vector<8x32xf32>
    %133 = arith.subf %132, %124 : vector<8x32xf32>
    %134 = arith.mulf %133, %131 : vector<8x32xf32>
    %135 = arith.mulf %124, %106 : vector<8x32xf32>
    %136 = arith.addf %134, %135 : vector<8x32xf32>
    %cst_28 = arith.constant dense<0.000000e+00> : vector<8x96xf32>
    %137 = tpu.matmul %136, %14, %cst_28 {dimension_numbers = #tpu.dot_dimension_numbers<[1], [0], [0], [1], [0, 0, 1, 1], [], []>} : vector<8x32xf32>, vector<32x96xf32>, vector<8x96xf32> -> vector<8x96xf32>
    %138 = vector.extract_strided_slice %13 {offsets = [32, 0], sizes = [8, 96], strides = [1, 1]} : vector<128x96xf32> to vector<8x96xf32>
    %139 = vector.extract_strided_slice %138 {offsets = [0, 0], sizes = [8, 32], strides = [1, 1]} : vector<8x96xf32> to vector<8x32xf32>
    %140 = vector.extract_strided_slice %137 {offsets = [0, 0], sizes = [8, 32], strides = [1, 1]} : vector<8x96xf32> to vector<8x32xf32>
    %141 = arith.addf %139, %140 : vector<8x32xf32>
    %142 = arith.negf %141 : vector<8x32xf32>
    %143 = math.exp %142 : vector<8x32xf32>
    %cst_29 = arith.constant 1.000000e+00 : f32
    %144 = vector.broadcast %cst_29 : f32 to vector<8x32xf32>
    %145 = arith.addf %144, %143 : vector<8x32xf32>
    %146 = arith.divf %144, %145 : vector<8x32xf32>
    %147 = vector.extract_strided_slice %138 {offsets = [0, 32], sizes = [8, 32], strides = [1, 1]} : vector<8x96xf32> to vector<8x32xf32>
    %148 = vector.extract_strided_slice %137 {offsets = [0, 32], sizes = [8, 32], strides = [1, 1]} : vector<8x96xf32> to vector<8x32xf32>
    %149 = arith.addf %147, %148 : vector<8x32xf32>
    %150 = arith.negf %149 : vector<8x32xf32>
    %151 = math.exp %150 : vector<8x32xf32>
    %cst_30 = arith.constant 1.000000e+00 : f32
    %152 = vector.broadcast %cst_30 : f32 to vector<8x32xf32>
    %153 = arith.addf %152, %151 : vector<8x32xf32>
    %154 = arith.divf %152, %153 : vector<8x32xf32>
    %155 = vector.extract_strided_slice %138 {offsets = [0, 64], sizes = [8, 32], strides = [1, 1]} : vector<8x96xf32> to vector<8x32xf32>
    %156 = vector.extract_strided_slice %137 {offsets = [0, 64], sizes = [8, 32], strides = [1, 1]} : vector<8x96xf32> to vector<8x32xf32>
    %157 = vector.broadcast %15 : vector<1x32xf32> to vector<8x32xf32>
    %158 = arith.addf %156, %157 : vector<8x32xf32>
    %159 = arith.mulf %146, %158 : vector<8x32xf32>
    %160 = arith.addf %155, %159 : vector<8x32xf32>
    %161 = math.tanh %160 : vector<8x32xf32>
    %cst_31 = arith.constant 1.000000e+00 : f32
    %162 = vector.broadcast %cst_31 : f32 to vector<8x32xf32>
    %163 = arith.subf %162, %154 : vector<8x32xf32>
    %164 = arith.mulf %163, %161 : vector<8x32xf32>
    %165 = arith.mulf %154, %136 : vector<8x32xf32>
    %166 = arith.addf %164, %165 : vector<8x32xf32>
    %cst_32 = arith.constant dense<0.000000e+00> : vector<8x96xf32>
    %167 = tpu.matmul %166, %14, %cst_32 {dimension_numbers = #tpu.dot_dimension_numbers<[1], [0], [0], [1], [0, 0, 1, 1], [], []>} : vector<8x32xf32>, vector<32x96xf32>, vector<8x96xf32> -> vector<8x96xf32>
    %168 = vector.extract_strided_slice %13 {offsets = [40, 0], sizes = [8, 96], strides = [1, 1]} : vector<128x96xf32> to vector<8x96xf32>
    %169 = vector.extract_strided_slice %168 {offsets = [0, 0], sizes = [8, 32], strides = [1, 1]} : vector<8x96xf32> to vector<8x32xf32>
    %170 = vector.extract_strided_slice %167 {offsets = [0, 0], sizes = [8, 32], strides = [1, 1]} : vector<8x96xf32> to vector<8x32xf32>
    %171 = arith.addf %169, %170 : vector<8x32xf32>
    %172 = arith.negf %171 : vector<8x32xf32>
    %173 = math.exp %172 : vector<8x32xf32>
    %cst_33 = arith.constant 1.000000e+00 : f32
    %174 = vector.broadcast %cst_33 : f32 to vector<8x32xf32>
    %175 = arith.addf %174, %173 : vector<8x32xf32>
    %176 = arith.divf %174, %175 : vector<8x32xf32>
    %177 = vector.extract_strided_slice %168 {offsets = [0, 32], sizes = [8, 32], strides = [1, 1]} : vector<8x96xf32> to vector<8x32xf32>
    %178 = vector.extract_strided_slice %167 {offsets = [0, 32], sizes = [8, 32], strides = [1, 1]} : vector<8x96xf32> to vector<8x32xf32>
    %179 = arith.addf %177, %178 : vector<8x32xf32>
    %180 = arith.negf %179 : vector<8x32xf32>
    %181 = math.exp %180 : vector<8x32xf32>
    %cst_34 = arith.constant 1.000000e+00 : f32
    %182 = vector.broadcast %cst_34 : f32 to vector<8x32xf32>
    %183 = arith.addf %182, %181 : vector<8x32xf32>
    %184 = arith.divf %182, %183 : vector<8x32xf32>
    %185 = vector.extract_strided_slice %168 {offsets = [0, 64], sizes = [8, 32], strides = [1, 1]} : vector<8x96xf32> to vector<8x32xf32>
    %186 = vector.extract_strided_slice %167 {offsets = [0, 64], sizes = [8, 32], strides = [1, 1]} : vector<8x96xf32> to vector<8x32xf32>
    %187 = vector.broadcast %15 : vector<1x32xf32> to vector<8x32xf32>
    %188 = arith.addf %186, %187 : vector<8x32xf32>
    %189 = arith.mulf %176, %188 : vector<8x32xf32>
    %190 = arith.addf %185, %189 : vector<8x32xf32>
    %191 = math.tanh %190 : vector<8x32xf32>
    %cst_35 = arith.constant 1.000000e+00 : f32
    %192 = vector.broadcast %cst_35 : f32 to vector<8x32xf32>
    %193 = arith.subf %192, %184 : vector<8x32xf32>
    %194 = arith.mulf %193, %191 : vector<8x32xf32>
    %195 = arith.mulf %184, %166 : vector<8x32xf32>
    %196 = arith.addf %194, %195 : vector<8x32xf32>
    %cst_36 = arith.constant dense<0.000000e+00> : vector<8x96xf32>
    %197 = tpu.matmul %196, %14, %cst_36 {dimension_numbers = #tpu.dot_dimension_numbers<[1], [0], [0], [1], [0, 0, 1, 1], [], []>} : vector<8x32xf32>, vector<32x96xf32>, vector<8x96xf32> -> vector<8x96xf32>
    %198 = vector.extract_strided_slice %13 {offsets = [48, 0], sizes = [8, 96], strides = [1, 1]} : vector<128x96xf32> to vector<8x96xf32>
    %199 = vector.extract_strided_slice %198 {offsets = [0, 0], sizes = [8, 32], strides = [1, 1]} : vector<8x96xf32> to vector<8x32xf32>
    %200 = vector.extract_strided_slice %197 {offsets = [0, 0], sizes = [8, 32], strides = [1, 1]} : vector<8x96xf32> to vector<8x32xf32>
    %201 = arith.addf %199, %200 : vector<8x32xf32>
    %202 = arith.negf %201 : vector<8x32xf32>
    %203 = math.exp %202 : vector<8x32xf32>
    %cst_37 = arith.constant 1.000000e+00 : f32
    %204 = vector.broadcast %cst_37 : f32 to vector<8x32xf32>
    %205 = arith.addf %204, %203 : vector<8x32xf32>
    %206 = arith.divf %204, %205 : vector<8x32xf32>
    %207 = vector.extract_strided_slice %198 {offsets = [0, 32], sizes = [8, 32], strides = [1, 1]} : vector<8x96xf32> to vector<8x32xf32>
    %208 = vector.extract_strided_slice %197 {offsets = [0, 32], sizes = [8, 32], strides = [1, 1]} : vector<8x96xf32> to vector<8x32xf32>
    %209 = arith.addf %207, %208 : vector<8x32xf32>
    %210 = arith.negf %209 : vector<8x32xf32>
    %211 = math.exp %210 : vector<8x32xf32>
    %cst_38 = arith.constant 1.000000e+00 : f32
    %212 = vector.broadcast %cst_38 : f32 to vector<8x32xf32>
    %213 = arith.addf %212, %211 : vector<8x32xf32>
    %214 = arith.divf %212, %213 : vector<8x32xf32>
    %215 = vector.extract_strided_slice %198 {offsets = [0, 64], sizes = [8, 32], strides = [1, 1]} : vector<8x96xf32> to vector<8x32xf32>
    %216 = vector.extract_strided_slice %197 {offsets = [0, 64], sizes = [8, 32], strides = [1, 1]} : vector<8x96xf32> to vector<8x32xf32>
    %217 = vector.broadcast %15 : vector<1x32xf32> to vector<8x32xf32>
    %218 = arith.addf %216, %217 : vector<8x32xf32>
    %219 = arith.mulf %206, %218 : vector<8x32xf32>
    %220 = arith.addf %215, %219 : vector<8x32xf32>
    %221 = math.tanh %220 : vector<8x32xf32>
    %cst_39 = arith.constant 1.000000e+00 : f32
    %222 = vector.broadcast %cst_39 : f32 to vector<8x32xf32>
    %223 = arith.subf %222, %214 : vector<8x32xf32>
    %224 = arith.mulf %223, %221 : vector<8x32xf32>
    %225 = arith.mulf %214, %196 : vector<8x32xf32>
    %226 = arith.addf %224, %225 : vector<8x32xf32>
    %cst_40 = arith.constant dense<0.000000e+00> : vector<8x96xf32>
    %227 = tpu.matmul %226, %14, %cst_40 {dimension_numbers = #tpu.dot_dimension_numbers<[1], [0], [0], [1], [0, 0, 1, 1], [], []>} : vector<8x32xf32>, vector<32x96xf32>, vector<8x96xf32> -> vector<8x96xf32>
    %228 = vector.extract_strided_slice %13 {offsets = [56, 0], sizes = [8, 96], strides = [1, 1]} : vector<128x96xf32> to vector<8x96xf32>
    %229 = vector.extract_strided_slice %228 {offsets = [0, 0], sizes = [8, 32], strides = [1, 1]} : vector<8x96xf32> to vector<8x32xf32>
    %230 = vector.extract_strided_slice %227 {offsets = [0, 0], sizes = [8, 32], strides = [1, 1]} : vector<8x96xf32> to vector<8x32xf32>
    %231 = arith.addf %229, %230 : vector<8x32xf32>
    %232 = arith.negf %231 : vector<8x32xf32>
    %233 = math.exp %232 : vector<8x32xf32>
    %cst_41 = arith.constant 1.000000e+00 : f32
    %234 = vector.broadcast %cst_41 : f32 to vector<8x32xf32>
    %235 = arith.addf %234, %233 : vector<8x32xf32>
    %236 = arith.divf %234, %235 : vector<8x32xf32>
    %237 = vector.extract_strided_slice %228 {offsets = [0, 32], sizes = [8, 32], strides = [1, 1]} : vector<8x96xf32> to vector<8x32xf32>
    %238 = vector.extract_strided_slice %227 {offsets = [0, 32], sizes = [8, 32], strides = [1, 1]} : vector<8x96xf32> to vector<8x32xf32>
    %239 = arith.addf %237, %238 : vector<8x32xf32>
    %240 = arith.negf %239 : vector<8x32xf32>
    %241 = math.exp %240 : vector<8x32xf32>
    %cst_42 = arith.constant 1.000000e+00 : f32
    %242 = vector.broadcast %cst_42 : f32 to vector<8x32xf32>
    %243 = arith.addf %242, %241 : vector<8x32xf32>
    %244 = arith.divf %242, %243 : vector<8x32xf32>
    %245 = vector.extract_strided_slice %228 {offsets = [0, 64], sizes = [8, 32], strides = [1, 1]} : vector<8x96xf32> to vector<8x32xf32>
    %246 = vector.extract_strided_slice %227 {offsets = [0, 64], sizes = [8, 32], strides = [1, 1]} : vector<8x96xf32> to vector<8x32xf32>
    %247 = vector.broadcast %15 : vector<1x32xf32> to vector<8x32xf32>
    %248 = arith.addf %246, %247 : vector<8x32xf32>
    %249 = arith.mulf %236, %248 : vector<8x32xf32>
    %250 = arith.addf %245, %249 : vector<8x32xf32>
    %251 = math.tanh %250 : vector<8x32xf32>
    %cst_43 = arith.constant 1.000000e+00 : f32
    %252 = vector.broadcast %cst_43 : f32 to vector<8x32xf32>
    %253 = arith.subf %252, %244 : vector<8x32xf32>
    %254 = arith.mulf %253, %251 : vector<8x32xf32>
    %255 = arith.mulf %244, %226 : vector<8x32xf32>
    %256 = arith.addf %254, %255 : vector<8x32xf32>
    %cst_44 = arith.constant dense<0.000000e+00> : vector<8x96xf32>
    %257 = tpu.matmul %256, %14, %cst_44 {dimension_numbers = #tpu.dot_dimension_numbers<[1], [0], [0], [1], [0, 0, 1, 1], [], []>} : vector<8x32xf32>, vector<32x96xf32>, vector<8x96xf32> -> vector<8x96xf32>
    %258 = vector.extract_strided_slice %13 {offsets = [64, 0], sizes = [8, 96], strides = [1, 1]} : vector<128x96xf32> to vector<8x96xf32>
    %259 = vector.extract_strided_slice %258 {offsets = [0, 0], sizes = [8, 32], strides = [1, 1]} : vector<8x96xf32> to vector<8x32xf32>
    %260 = vector.extract_strided_slice %257 {offsets = [0, 0], sizes = [8, 32], strides = [1, 1]} : vector<8x96xf32> to vector<8x32xf32>
    %261 = arith.addf %259, %260 : vector<8x32xf32>
    %262 = arith.negf %261 : vector<8x32xf32>
    %263 = math.exp %262 : vector<8x32xf32>
    %cst_45 = arith.constant 1.000000e+00 : f32
    %264 = vector.broadcast %cst_45 : f32 to vector<8x32xf32>
    %265 = arith.addf %264, %263 : vector<8x32xf32>
    %266 = arith.divf %264, %265 : vector<8x32xf32>
    %267 = vector.extract_strided_slice %258 {offsets = [0, 32], sizes = [8, 32], strides = [1, 1]} : vector<8x96xf32> to vector<8x32xf32>
    %268 = vector.extract_strided_slice %257 {offsets = [0, 32], sizes = [8, 32], strides = [1, 1]} : vector<8x96xf32> to vector<8x32xf32>
    %269 = arith.addf %267, %268 : vector<8x32xf32>
    %270 = arith.negf %269 : vector<8x32xf32>
    %271 = math.exp %270 : vector<8x32xf32>
    %cst_46 = arith.constant 1.000000e+00 : f32
    %272 = vector.broadcast %cst_46 : f32 to vector<8x32xf32>
    %273 = arith.addf %272, %271 : vector<8x32xf32>
    %274 = arith.divf %272, %273 : vector<8x32xf32>
    %275 = vector.extract_strided_slice %258 {offsets = [0, 64], sizes = [8, 32], strides = [1, 1]} : vector<8x96xf32> to vector<8x32xf32>
    %276 = vector.extract_strided_slice %257 {offsets = [0, 64], sizes = [8, 32], strides = [1, 1]} : vector<8x96xf32> to vector<8x32xf32>
    %277 = vector.broadcast %15 : vector<1x32xf32> to vector<8x32xf32>
    %278 = arith.addf %276, %277 : vector<8x32xf32>
    %279 = arith.mulf %266, %278 : vector<8x32xf32>
    %280 = arith.addf %275, %279 : vector<8x32xf32>
    %281 = math.tanh %280 : vector<8x32xf32>
    %cst_47 = arith.constant 1.000000e+00 : f32
    %282 = vector.broadcast %cst_47 : f32 to vector<8x32xf32>
    %283 = arith.subf %282, %274 : vector<8x32xf32>
    %284 = arith.mulf %283, %281 : vector<8x32xf32>
    %285 = arith.mulf %274, %256 : vector<8x32xf32>
    %286 = arith.addf %284, %285 : vector<8x32xf32>
    %cst_48 = arith.constant dense<0.000000e+00> : vector<8x96xf32>
    %287 = tpu.matmul %286, %14, %cst_48 {dimension_numbers = #tpu.dot_dimension_numbers<[1], [0], [0], [1], [0, 0, 1, 1], [], []>} : vector<8x32xf32>, vector<32x96xf32>, vector<8x96xf32> -> vector<8x96xf32>
    %288 = vector.extract_strided_slice %13 {offsets = [72, 0], sizes = [8, 96], strides = [1, 1]} : vector<128x96xf32> to vector<8x96xf32>
    %289 = vector.extract_strided_slice %288 {offsets = [0, 0], sizes = [8, 32], strides = [1, 1]} : vector<8x96xf32> to vector<8x32xf32>
    %290 = vector.extract_strided_slice %287 {offsets = [0, 0], sizes = [8, 32], strides = [1, 1]} : vector<8x96xf32> to vector<8x32xf32>
    %291 = arith.addf %289, %290 : vector<8x32xf32>
    %292 = arith.negf %291 : vector<8x32xf32>
    %293 = math.exp %292 : vector<8x32xf32>
    %cst_49 = arith.constant 1.000000e+00 : f32
    %294 = vector.broadcast %cst_49 : f32 to vector<8x32xf32>
    %295 = arith.addf %294, %293 : vector<8x32xf32>
    %296 = arith.divf %294, %295 : vector<8x32xf32>
    %297 = vector.extract_strided_slice %288 {offsets = [0, 32], sizes = [8, 32], strides = [1, 1]} : vector<8x96xf32> to vector<8x32xf32>
    %298 = vector.extract_strided_slice %287 {offsets = [0, 32], sizes = [8, 32], strides = [1, 1]} : vector<8x96xf32> to vector<8x32xf32>
    %299 = arith.addf %297, %298 : vector<8x32xf32>
    %300 = arith.negf %299 : vector<8x32xf32>
    %301 = math.exp %300 : vector<8x32xf32>
    %cst_50 = arith.constant 1.000000e+00 : f32
    %302 = vector.broadcast %cst_50 : f32 to vector<8x32xf32>
    %303 = arith.addf %302, %301 : vector<8x32xf32>
    %304 = arith.divf %302, %303 : vector<8x32xf32>
    %305 = vector.extract_strided_slice %288 {offsets = [0, 64], sizes = [8, 32], strides = [1, 1]} : vector<8x96xf32> to vector<8x32xf32>
    %306 = vector.extract_strided_slice %287 {offsets = [0, 64], sizes = [8, 32], strides = [1, 1]} : vector<8x96xf32> to vector<8x32xf32>
    %307 = vector.broadcast %15 : vector<1x32xf32> to vector<8x32xf32>
    %308 = arith.addf %306, %307 : vector<8x32xf32>
    %309 = arith.mulf %296, %308 : vector<8x32xf32>
    %310 = arith.addf %305, %309 : vector<8x32xf32>
    %311 = math.tanh %310 : vector<8x32xf32>
    %cst_51 = arith.constant 1.000000e+00 : f32
    %312 = vector.broadcast %cst_51 : f32 to vector<8x32xf32>
    %313 = arith.subf %312, %304 : vector<8x32xf32>
    %314 = arith.mulf %313, %311 : vector<8x32xf32>
    %315 = arith.mulf %304, %286 : vector<8x32xf32>
    %316 = arith.addf %314, %315 : vector<8x32xf32>
    %cst_52 = arith.constant dense<0.000000e+00> : vector<8x96xf32>
    %317 = tpu.matmul %316, %14, %cst_52 {dimension_numbers = #tpu.dot_dimension_numbers<[1], [0], [0], [1], [0, 0, 1, 1], [], []>} : vector<8x32xf32>, vector<32x96xf32>, vector<8x96xf32> -> vector<8x96xf32>
    %318 = vector.extract_strided_slice %13 {offsets = [80, 0], sizes = [8, 96], strides = [1, 1]} : vector<128x96xf32> to vector<8x96xf32>
    %319 = vector.extract_strided_slice %318 {offsets = [0, 0], sizes = [8, 32], strides = [1, 1]} : vector<8x96xf32> to vector<8x32xf32>
    %320 = vector.extract_strided_slice %317 {offsets = [0, 0], sizes = [8, 32], strides = [1, 1]} : vector<8x96xf32> to vector<8x32xf32>
    %321 = arith.addf %319, %320 : vector<8x32xf32>
    %322 = arith.negf %321 : vector<8x32xf32>
    %323 = math.exp %322 : vector<8x32xf32>
    %cst_53 = arith.constant 1.000000e+00 : f32
    %324 = vector.broadcast %cst_53 : f32 to vector<8x32xf32>
    %325 = arith.addf %324, %323 : vector<8x32xf32>
    %326 = arith.divf %324, %325 : vector<8x32xf32>
    %327 = vector.extract_strided_slice %318 {offsets = [0, 32], sizes = [8, 32], strides = [1, 1]} : vector<8x96xf32> to vector<8x32xf32>
    %328 = vector.extract_strided_slice %317 {offsets = [0, 32], sizes = [8, 32], strides = [1, 1]} : vector<8x96xf32> to vector<8x32xf32>
    %329 = arith.addf %327, %328 : vector<8x32xf32>
    %330 = arith.negf %329 : vector<8x32xf32>
    %331 = math.exp %330 : vector<8x32xf32>
    %cst_54 = arith.constant 1.000000e+00 : f32
    %332 = vector.broadcast %cst_54 : f32 to vector<8x32xf32>
    %333 = arith.addf %332, %331 : vector<8x32xf32>
    %334 = arith.divf %332, %333 : vector<8x32xf32>
    %335 = vector.extract_strided_slice %318 {offsets = [0, 64], sizes = [8, 32], strides = [1, 1]} : vector<8x96xf32> to vector<8x32xf32>
    %336 = vector.extract_strided_slice %317 {offsets = [0, 64], sizes = [8, 32], strides = [1, 1]} : vector<8x96xf32> to vector<8x32xf32>
    %337 = vector.broadcast %15 : vector<1x32xf32> to vector<8x32xf32>
    %338 = arith.addf %336, %337 : vector<8x32xf32>
    %339 = arith.mulf %326, %338 : vector<8x32xf32>
    %340 = arith.addf %335, %339 : vector<8x32xf32>
    %341 = math.tanh %340 : vector<8x32xf32>
    %cst_55 = arith.constant 1.000000e+00 : f32
    %342 = vector.broadcast %cst_55 : f32 to vector<8x32xf32>
    %343 = arith.subf %342, %334 : vector<8x32xf32>
    %344 = arith.mulf %343, %341 : vector<8x32xf32>
    %345 = arith.mulf %334, %316 : vector<8x32xf32>
    %346 = arith.addf %344, %345 : vector<8x32xf32>
    %cst_56 = arith.constant dense<0.000000e+00> : vector<8x96xf32>
    %347 = tpu.matmul %346, %14, %cst_56 {dimension_numbers = #tpu.dot_dimension_numbers<[1], [0], [0], [1], [0, 0, 1, 1], [], []>} : vector<8x32xf32>, vector<32x96xf32>, vector<8x96xf32> -> vector<8x96xf32>
    %348 = vector.extract_strided_slice %13 {offsets = [88, 0], sizes = [8, 96], strides = [1, 1]} : vector<128x96xf32> to vector<8x96xf32>
    %349 = vector.extract_strided_slice %348 {offsets = [0, 0], sizes = [8, 32], strides = [1, 1]} : vector<8x96xf32> to vector<8x32xf32>
    %350 = vector.extract_strided_slice %347 {offsets = [0, 0], sizes = [8, 32], strides = [1, 1]} : vector<8x96xf32> to vector<8x32xf32>
    %351 = arith.addf %349, %350 : vector<8x32xf32>
    %352 = arith.negf %351 : vector<8x32xf32>
    %353 = math.exp %352 : vector<8x32xf32>
    %cst_57 = arith.constant 1.000000e+00 : f32
    %354 = vector.broadcast %cst_57 : f32 to vector<8x32xf32>
    %355 = arith.addf %354, %353 : vector<8x32xf32>
    %356 = arith.divf %354, %355 : vector<8x32xf32>
    %357 = vector.extract_strided_slice %348 {offsets = [0, 32], sizes = [8, 32], strides = [1, 1]} : vector<8x96xf32> to vector<8x32xf32>
    %358 = vector.extract_strided_slice %347 {offsets = [0, 32], sizes = [8, 32], strides = [1, 1]} : vector<8x96xf32> to vector<8x32xf32>
    %359 = arith.addf %357, %358 : vector<8x32xf32>
    %360 = arith.negf %359 : vector<8x32xf32>
    %361 = math.exp %360 : vector<8x32xf32>
    %cst_58 = arith.constant 1.000000e+00 : f32
    %362 = vector.broadcast %cst_58 : f32 to vector<8x32xf32>
    %363 = arith.addf %362, %361 : vector<8x32xf32>
    %364 = arith.divf %362, %363 : vector<8x32xf32>
    %365 = vector.extract_strided_slice %348 {offsets = [0, 64], sizes = [8, 32], strides = [1, 1]} : vector<8x96xf32> to vector<8x32xf32>
    %366 = vector.extract_strided_slice %347 {offsets = [0, 64], sizes = [8, 32], strides = [1, 1]} : vector<8x96xf32> to vector<8x32xf32>
    %367 = vector.broadcast %15 : vector<1x32xf32> to vector<8x32xf32>
    %368 = arith.addf %366, %367 : vector<8x32xf32>
    %369 = arith.mulf %356, %368 : vector<8x32xf32>
    %370 = arith.addf %365, %369 : vector<8x32xf32>
    %371 = math.tanh %370 : vector<8x32xf32>
    %cst_59 = arith.constant 1.000000e+00 : f32
    %372 = vector.broadcast %cst_59 : f32 to vector<8x32xf32>
    %373 = arith.subf %372, %364 : vector<8x32xf32>
    %374 = arith.mulf %373, %371 : vector<8x32xf32>
    %375 = arith.mulf %364, %346 : vector<8x32xf32>
    %376 = arith.addf %374, %375 : vector<8x32xf32>
    %cst_60 = arith.constant dense<0.000000e+00> : vector<8x96xf32>
    %377 = tpu.matmul %376, %14, %cst_60 {dimension_numbers = #tpu.dot_dimension_numbers<[1], [0], [0], [1], [0, 0, 1, 1], [], []>} : vector<8x32xf32>, vector<32x96xf32>, vector<8x96xf32> -> vector<8x96xf32>
    %378 = vector.extract_strided_slice %13 {offsets = [96, 0], sizes = [8, 96], strides = [1, 1]} : vector<128x96xf32> to vector<8x96xf32>
    %379 = vector.extract_strided_slice %378 {offsets = [0, 0], sizes = [8, 32], strides = [1, 1]} : vector<8x96xf32> to vector<8x32xf32>
    %380 = vector.extract_strided_slice %377 {offsets = [0, 0], sizes = [8, 32], strides = [1, 1]} : vector<8x96xf32> to vector<8x32xf32>
    %381 = arith.addf %379, %380 : vector<8x32xf32>
    %382 = arith.negf %381 : vector<8x32xf32>
    %383 = math.exp %382 : vector<8x32xf32>
    %cst_61 = arith.constant 1.000000e+00 : f32
    %384 = vector.broadcast %cst_61 : f32 to vector<8x32xf32>
    %385 = arith.addf %384, %383 : vector<8x32xf32>
    %386 = arith.divf %384, %385 : vector<8x32xf32>
    %387 = vector.extract_strided_slice %378 {offsets = [0, 32], sizes = [8, 32], strides = [1, 1]} : vector<8x96xf32> to vector<8x32xf32>
    %388 = vector.extract_strided_slice %377 {offsets = [0, 32], sizes = [8, 32], strides = [1, 1]} : vector<8x96xf32> to vector<8x32xf32>
    %389 = arith.addf %387, %388 : vector<8x32xf32>
    %390 = arith.negf %389 : vector<8x32xf32>
    %391 = math.exp %390 : vector<8x32xf32>
    %cst_62 = arith.constant 1.000000e+00 : f32
    %392 = vector.broadcast %cst_62 : f32 to vector<8x32xf32>
    %393 = arith.addf %392, %391 : vector<8x32xf32>
    %394 = arith.divf %392, %393 : vector<8x32xf32>
    %395 = vector.extract_strided_slice %378 {offsets = [0, 64], sizes = [8, 32], strides = [1, 1]} : vector<8x96xf32> to vector<8x32xf32>
    %396 = vector.extract_strided_slice %377 {offsets = [0, 64], sizes = [8, 32], strides = [1, 1]} : vector<8x96xf32> to vector<8x32xf32>
    %397 = vector.broadcast %15 : vector<1x32xf32> to vector<8x32xf32>
    %398 = arith.addf %396, %397 : vector<8x32xf32>
    %399 = arith.mulf %386, %398 : vector<8x32xf32>
    %400 = arith.addf %395, %399 : vector<8x32xf32>
    %401 = math.tanh %400 : vector<8x32xf32>
    %cst_63 = arith.constant 1.000000e+00 : f32
    %402 = vector.broadcast %cst_63 : f32 to vector<8x32xf32>
    %403 = arith.subf %402, %394 : vector<8x32xf32>
    %404 = arith.mulf %403, %401 : vector<8x32xf32>
    %405 = arith.mulf %394, %376 : vector<8x32xf32>
    %406 = arith.addf %404, %405 : vector<8x32xf32>
    %cst_64 = arith.constant dense<0.000000e+00> : vector<8x96xf32>
    %407 = tpu.matmul %406, %14, %cst_64 {dimension_numbers = #tpu.dot_dimension_numbers<[1], [0], [0], [1], [0, 0, 1, 1], [], []>} : vector<8x32xf32>, vector<32x96xf32>, vector<8x96xf32> -> vector<8x96xf32>
    %408 = vector.extract_strided_slice %13 {offsets = [104, 0], sizes = [8, 96], strides = [1, 1]} : vector<128x96xf32> to vector<8x96xf32>
    %409 = vector.extract_strided_slice %408 {offsets = [0, 0], sizes = [8, 32], strides = [1, 1]} : vector<8x96xf32> to vector<8x32xf32>
    %410 = vector.extract_strided_slice %407 {offsets = [0, 0], sizes = [8, 32], strides = [1, 1]} : vector<8x96xf32> to vector<8x32xf32>
    %411 = arith.addf %409, %410 : vector<8x32xf32>
    %412 = arith.negf %411 : vector<8x32xf32>
    %413 = math.exp %412 : vector<8x32xf32>
    %cst_65 = arith.constant 1.000000e+00 : f32
    %414 = vector.broadcast %cst_65 : f32 to vector<8x32xf32>
    %415 = arith.addf %414, %413 : vector<8x32xf32>
    %416 = arith.divf %414, %415 : vector<8x32xf32>
    %417 = vector.extract_strided_slice %408 {offsets = [0, 32], sizes = [8, 32], strides = [1, 1]} : vector<8x96xf32> to vector<8x32xf32>
    %418 = vector.extract_strided_slice %407 {offsets = [0, 32], sizes = [8, 32], strides = [1, 1]} : vector<8x96xf32> to vector<8x32xf32>
    %419 = arith.addf %417, %418 : vector<8x32xf32>
    %420 = arith.negf %419 : vector<8x32xf32>
    %421 = math.exp %420 : vector<8x32xf32>
    %cst_66 = arith.constant 1.000000e+00 : f32
    %422 = vector.broadcast %cst_66 : f32 to vector<8x32xf32>
    %423 = arith.addf %422, %421 : vector<8x32xf32>
    %424 = arith.divf %422, %423 : vector<8x32xf32>
    %425 = vector.extract_strided_slice %408 {offsets = [0, 64], sizes = [8, 32], strides = [1, 1]} : vector<8x96xf32> to vector<8x32xf32>
    %426 = vector.extract_strided_slice %407 {offsets = [0, 64], sizes = [8, 32], strides = [1, 1]} : vector<8x96xf32> to vector<8x32xf32>
    %427 = vector.broadcast %15 : vector<1x32xf32> to vector<8x32xf32>
    %428 = arith.addf %426, %427 : vector<8x32xf32>
    %429 = arith.mulf %416, %428 : vector<8x32xf32>
    %430 = arith.addf %425, %429 : vector<8x32xf32>
    %431 = math.tanh %430 : vector<8x32xf32>
    %cst_67 = arith.constant 1.000000e+00 : f32
    %432 = vector.broadcast %cst_67 : f32 to vector<8x32xf32>
    %433 = arith.subf %432, %424 : vector<8x32xf32>
    %434 = arith.mulf %433, %431 : vector<8x32xf32>
    %435 = arith.mulf %424, %406 : vector<8x32xf32>
    %436 = arith.addf %434, %435 : vector<8x32xf32>
    %cst_68 = arith.constant dense<0.000000e+00> : vector<8x96xf32>
    %437 = tpu.matmul %436, %14, %cst_68 {dimension_numbers = #tpu.dot_dimension_numbers<[1], [0], [0], [1], [0, 0, 1, 1], [], []>} : vector<8x32xf32>, vector<32x96xf32>, vector<8x96xf32> -> vector<8x96xf32>
    %438 = vector.extract_strided_slice %13 {offsets = [112, 0], sizes = [8, 96], strides = [1, 1]} : vector<128x96xf32> to vector<8x96xf32>
    %439 = vector.extract_strided_slice %438 {offsets = [0, 0], sizes = [8, 32], strides = [1, 1]} : vector<8x96xf32> to vector<8x32xf32>
    %440 = vector.extract_strided_slice %437 {offsets = [0, 0], sizes = [8, 32], strides = [1, 1]} : vector<8x96xf32> to vector<8x32xf32>
    %441 = arith.addf %439, %440 : vector<8x32xf32>
    %442 = arith.negf %441 : vector<8x32xf32>
    %443 = math.exp %442 : vector<8x32xf32>
    %cst_69 = arith.constant 1.000000e+00 : f32
    %444 = vector.broadcast %cst_69 : f32 to vector<8x32xf32>
    %445 = arith.addf %444, %443 : vector<8x32xf32>
    %446 = arith.divf %444, %445 : vector<8x32xf32>
    %447 = vector.extract_strided_slice %438 {offsets = [0, 32], sizes = [8, 32], strides = [1, 1]} : vector<8x96xf32> to vector<8x32xf32>
    %448 = vector.extract_strided_slice %437 {offsets = [0, 32], sizes = [8, 32], strides = [1, 1]} : vector<8x96xf32> to vector<8x32xf32>
    %449 = arith.addf %447, %448 : vector<8x32xf32>
    %450 = arith.negf %449 : vector<8x32xf32>
    %451 = math.exp %450 : vector<8x32xf32>
    %cst_70 = arith.constant 1.000000e+00 : f32
    %452 = vector.broadcast %cst_70 : f32 to vector<8x32xf32>
    %453 = arith.addf %452, %451 : vector<8x32xf32>
    %454 = arith.divf %452, %453 : vector<8x32xf32>
    %455 = vector.extract_strided_slice %438 {offsets = [0, 64], sizes = [8, 32], strides = [1, 1]} : vector<8x96xf32> to vector<8x32xf32>
    %456 = vector.extract_strided_slice %437 {offsets = [0, 64], sizes = [8, 32], strides = [1, 1]} : vector<8x96xf32> to vector<8x32xf32>
    %457 = vector.broadcast %15 : vector<1x32xf32> to vector<8x32xf32>
    %458 = arith.addf %456, %457 : vector<8x32xf32>
    %459 = arith.mulf %446, %458 : vector<8x32xf32>
    %460 = arith.addf %455, %459 : vector<8x32xf32>
    %461 = math.tanh %460 : vector<8x32xf32>
    %cst_71 = arith.constant 1.000000e+00 : f32
    %462 = vector.broadcast %cst_71 : f32 to vector<8x32xf32>
    %463 = arith.subf %462, %454 : vector<8x32xf32>
    %464 = arith.mulf %463, %461 : vector<8x32xf32>
    %465 = arith.mulf %454, %436 : vector<8x32xf32>
    %466 = arith.addf %464, %465 : vector<8x32xf32>
    %cst_72 = arith.constant dense<0.000000e+00> : vector<8x96xf32>
    %467 = tpu.matmul %466, %14, %cst_72 {dimension_numbers = #tpu.dot_dimension_numbers<[1], [0], [0], [1], [0, 0, 1, 1], [], []>} : vector<8x32xf32>, vector<32x96xf32>, vector<8x96xf32> -> vector<8x96xf32>
    %468 = vector.extract_strided_slice %13 {offsets = [120, 0], sizes = [8, 96], strides = [1, 1]} : vector<128x96xf32> to vector<8x96xf32>
    %469 = vector.extract_strided_slice %468 {offsets = [0, 0], sizes = [8, 32], strides = [1, 1]} : vector<8x96xf32> to vector<8x32xf32>
    %470 = vector.extract_strided_slice %467 {offsets = [0, 0], sizes = [8, 32], strides = [1, 1]} : vector<8x96xf32> to vector<8x32xf32>
    %471 = arith.addf %469, %470 : vector<8x32xf32>
    %472 = arith.negf %471 : vector<8x32xf32>
    %473 = math.exp %472 : vector<8x32xf32>
    %cst_73 = arith.constant 1.000000e+00 : f32
    %474 = vector.broadcast %cst_73 : f32 to vector<8x32xf32>
    %475 = arith.addf %474, %473 : vector<8x32xf32>
    %476 = arith.divf %474, %475 : vector<8x32xf32>
    %477 = vector.extract_strided_slice %468 {offsets = [0, 32], sizes = [8, 32], strides = [1, 1]} : vector<8x96xf32> to vector<8x32xf32>
    %478 = vector.extract_strided_slice %467 {offsets = [0, 32], sizes = [8, 32], strides = [1, 1]} : vector<8x96xf32> to vector<8x32xf32>
    %479 = arith.addf %477, %478 : vector<8x32xf32>
    %480 = arith.negf %479 : vector<8x32xf32>
    %481 = math.exp %480 : vector<8x32xf32>
    %cst_74 = arith.constant 1.000000e+00 : f32
    %482 = vector.broadcast %cst_74 : f32 to vector<8x32xf32>
    %483 = arith.addf %482, %481 : vector<8x32xf32>
    %484 = arith.divf %482, %483 : vector<8x32xf32>
    %485 = vector.extract_strided_slice %468 {offsets = [0, 64], sizes = [8, 32], strides = [1, 1]} : vector<8x96xf32> to vector<8x32xf32>
    %486 = vector.extract_strided_slice %467 {offsets = [0, 64], sizes = [8, 32], strides = [1, 1]} : vector<8x96xf32> to vector<8x32xf32>
    %487 = vector.broadcast %15 : vector<1x32xf32> to vector<8x32xf32>
    %488 = arith.addf %486, %487 : vector<8x32xf32>
    %489 = arith.mulf %476, %488 : vector<8x32xf32>
    %490 = arith.addf %485, %489 : vector<8x32xf32>
    %491 = math.tanh %490 : vector<8x32xf32>
    %cst_75 = arith.constant 1.000000e+00 : f32
    %492 = vector.broadcast %cst_75 : f32 to vector<8x32xf32>
    %493 = arith.subf %492, %484 : vector<8x32xf32>
    %494 = arith.mulf %493, %491 : vector<8x32xf32>
    %495 = arith.mulf %484, %466 : vector<8x32xf32>
    %496 = arith.addf %494, %495 : vector<8x32xf32>
    %c0_76 = arith.constant 0 : index
    %c0_77 = arith.constant 0 : index
    %497 = vector.load %arg11[%c0_76, %c0_77] : memref<8x32xf32, #tpu.memory_space<vmem>>, vector<8x32xf32>
    tpu.vector_store %arg11[%c0_76, %c0_77], %496 {strides = array<i32>} : memref<8x32xf32, #tpu.memory_space<vmem>>, vector<8x32xf32>,
    %c0_i32_78 = arith.constant 0 : i32
    %498 = arith.cmpi eq, %arg0, %c0_i32_78 : i32
    %499 = arith.extui %498 : i1 to i32
    %c0_i32_79 = arith.constant 0 : i32
    %500 = arith.cmpi ne, %499, %c0_i32_79 : i32
    scf.if %500 {
      %cst_80 = arith.constant 0.000000e+00 : f32
      %501 = vector.broadcast %cst_80 : f32 to vector<8x32xf32>
      %502 = arith.cmpf ogt, %496, %501 : vector<8x32xf32>
      %cst_81 = arith.constant 0.000000e+00 : f32
      %503 = vector.broadcast %cst_81 : f32 to vector<8x32xf32>
      %504 = arith.minimumf %496, %503 : vector<8x32xf32>
      %505 = math.exp %504 : vector<8x32xf32>
      %cst_82 = arith.constant 1.000000e+00 : f32
      %506 = vector.broadcast %cst_82 : f32 to vector<8x32xf32>
      %507 = arith.subf %505, %506 : vector<8x32xf32>
      %508 = arith.select %502, %496, %507 : vector<8x32xi1>, vector<8x32xf32>
      %c0_83 = arith.constant 0 : index
      %c0_84 = arith.constant 0 : index
      %509 = vector.load %arg6[%c0_83, %c0_84] : memref<32x32xf32, #tpu.memory_space<vmem>>, vector<32x32xf32>
      %cst_85 = arith.constant dense<0.000000e+00> : vector<8x32xf32>
      %510 = tpu.matmul %508, %509, %cst_85 {dimension_numbers = #tpu.dot_dimension_numbers<[1], [0], [0], [1], [0, 0, 1, 1], [], []>} : vector<8x32xf32>, vector<32x32xf32>, vector<8x32xf32> -> vector<8x32xf32>
      %c0_86 = arith.constant 0 : index
      %c0_87 = arith.constant 0 : index
      %511 = vector.load %arg7[%c0_86, %c0_87] : memref<1x32xf32, #tpu.memory_space<vmem>>, vector<1x32xf32>
      %512 = vector.broadcast %511 : vector<1x32xf32> to vector<8x32xf32>
      %513 = arith.addf %510, %512 : vector<8x32xf32>
      %cst_88 = arith.constant 0.000000e+00 : f32
      %514 = vector.broadcast %cst_88 : f32 to vector<8x32xf32>
      %515 = arith.cmpf ogt, %513, %514 : vector<8x32xf32>
      %cst_89 = arith.constant 0.00999999977 : f32
      %516 = vector.broadcast %cst_89 : f32 to vector<8x32xf32>
      %517 = arith.mulf %516, %513 : vector<8x32xf32>
      %518 = arith.select %515, %513, %517 : vector<8x32xi1>, vector<8x32xf32>
      %c0_90 = arith.constant 0 : index
      %c0_91 = arith.constant 0 : index
      %519 = vector.load %arg8[%c0_90, %c0_91] : memref<32x5xf32, #tpu.memory_space<vmem>>, vector<32x5xf32>
      %cst_92 = arith.constant dense<0.000000e+00> : vector<8x5xf32>
      %520 = tpu.matmul %518, %519, %cst_92 {dimension_numbers = #tpu.dot_dimension_numbers<[1], [0], [0], [1], [0, 0, 1, 1], [], []>} : vector<8x32xf32>, vector<32x5xf32>, vector<8x5xf32> -> vector<8x5xf32>
      %c0_93 = arith.constant 0 : index
      %c0_94 = arith.constant 0 : index
      %521 = vector.load %arg9[%c0_93, %c0_94] : memref<1x5xf32, #tpu.memory_space<vmem>>, vector<1x5xf32>
      %522 = vector.broadcast %521 : vector<1x5xf32> to vector<8x5xf32>
      %523 = arith.addf %520, %522 : vector<8x5xf32>
      %cst_95 = arith.constant dense<0xFF800000> : vector<8xf32>
      %524 = vector.multi_reduction <maximumf>, %523, %cst_95 [1] : vector<8x5xf32> to vector<8xf32>
      %525 = vector.shape_cast %524 : vector<8xf32> to vector<8x1xf32>
      %526 = vector.broadcast %525 : vector<8x1xf32> to vector<8x5xf32>
      %527 = arith.subf %523, %526 : vector<8x5xf32>
      %528 = math.exp %527 : vector<8x5xf32>
      %cst_96 = arith.constant dense<0.000000e+00> : vector<8xf32>
      %529 = vector.multi_reduction <add>, %528, %cst_96 [1] : vector<8x5xf32> to vector<8xf32>
      %530 = vector.shape_cast %529 : vector<8xf32> to vector<8x1xf32>
      %531 = tpu.reciprocal %530 {approx = true} : vector<8x1xf32> -> vector<8x1xf32>
      %532 = vector.broadcast %531 : vector<8x1xf32> to vector<8x5xf32>
      %533 = arith.mulf %528, %532 : vector<8x5xf32>
      %c0_97 = arith.constant 0 : index
      %c0_98 = arith.constant 0 : index
      %534 = vector.load %arg10[%c0_97, %c0_98] : memref<8x5xf32, #tpu.memory_space<vmem>>, vector<8x5xf32>
      tpu.vector_store %arg10[%c0_97, %c0_98], %533 {strides = array<i32>} : memref<8x5xf32, #tpu.memory_space<vmem>>, vector<8x5xf32>,
    } else {
    }
    return
  }
  func.func @transform_0(%arg0: i32) -> (i32, i32) {
    %c0_i32 = arith.constant 0 : i32
    %c0_i32_0 = arith.constant 0 : i32
    return %arg0, %c0_i32 : i32, i32
  }
  func.func @transform_1(%arg0: i32) -> (i32, i32) {
    %c0_i32 = arith.constant 0 : i32
    %c0_i32_0 = arith.constant 0 : i32
    %c0_i32_1 = arith.constant 0 : i32
    return %c0_i32, %c0_i32_0 : i32, i32
  }
  func.func @transform_2(%arg0: i32) -> (i32, i32) {
    %c0_i32 = arith.constant 0 : i32
    %c0_i32_0 = arith.constant 0 : i32
    %c0_i32_1 = arith.constant 0 : i32
    return %c0_i32, %c0_i32_0 : i32, i32
  }
  func.func @transform_3(%arg0: i32) -> (i32, i32) {
    %c0_i32 = arith.constant 0 : i32
    %c0_i32_0 = arith.constant 0 : i32
    %c0_i32_1 = arith.constant 0 : i32
    return %c0_i32, %c0_i32_0 : i32, i32
  }
  func.func @transform_4(%arg0: i32) -> (i32, i32) {
    %c0_i32 = arith.constant 0 : i32
    %c0_i32_0 = arith.constant 0 : i32
    %c0_i32_1 = arith.constant 0 : i32
    return %c0_i32, %c0_i32_0 : i32, i32
  }
  func.func @transform_5(%arg0: i32) -> (i32, i32) {
    %c0_i32 = arith.constant 0 : i32
    %c0_i32_0 = arith.constant 0 : i32
    %c0_i32_1 = arith.constant 0 : i32
    return %c0_i32, %c0_i32_0 : i32, i32
  }
  func.func @transform_6(%arg0: i32) -> (i32, i32) {
    %c0_i32 = arith.constant 0 : i32
    %c0_i32_0 = arith.constant 0 : i32
    %c0_i32_1 = arith.constant 0 : i32
    return %c0_i32, %c0_i32_0 : i32, i32
  }
  func.func @transform_7(%arg0: i32) -> (i32, i32) {
    %c0_i32 = arith.constant 0 : i32
    %c0_i32_0 = arith.constant 0 : i32
    %c0_i32_1 = arith.constant 0 : i32
    return %c0_i32, %c0_i32_0 : i32, i32
  }
  func.func @transform_8(%arg0: i32) -> (i32, i32) {
    %c0_i32 = arith.constant 0 : i32
    %c0_i32_0 = arith.constant 0 : i32
    %c0_i32_1 = arith.constant 0 : i32
    return %c0_i32, %c0_i32_0 : i32, i32
  }
  func.func @transform_9(%arg0: i32) -> (i32, i32) {
    %c0_i32 = arith.constant 0 : i32
    %c0_i32_0 = arith.constant 0 : i32
    %c0_i32_1 = arith.constant 0 : i32
    return %c0_i32, %c0_i32_0 : i32, i32
  }
}

</mosaic_0001>

<bundles_post_ra>
// kernel: tpu_custom_call.1
= control target key start
LH: loop header
LB: loop body
LE: loop exit
PB: predicated region body
PF: predicated region fallthrough
CT: control target
= control target key end

     0   :  { %v2908_v2 = vmov 0   ;;  %v2909_v3 = vmov 0.0|0.0   ;;  %vm37_vm0 = vcmask 261120   ;;  %vm2910_vm1 = vmmov 0   ;;  %s3419_s0 = inlined_call_operand.vmem [shape: s32[128,1], index: 0, kind: input, shape index: {}]   ;;  %s3420_s1 = inlined_call_operand.vmem [shape: f32[128,96], index: 1, kind: input, shape index: {}]   ;;  %s3421_s2 = inlined_call_operand.vmem [shape: f32[1,96], index: 2, kind: input, shape index: {}]   ;;  %s3422_s3 = inlined_call_operand.vmem [shape: f32[32,96], index: 3, kind: input, shape index: {}]   ;;  %s3423_s4 = inlined_call_operand.vmem [shape: f32[1,32], index: 4, kind: input, shape index: {}]   ;;  %s3424_s5 = inlined_call_operand.vmem [shape: f32[32,32], index: 5, kind: input, shape index: {}]   ;;  %s3425_s6 = inlined_call_operand.vmem [shape: f32[1,32], index: 6, kind: input, shape index: {}]   ;;  %s3426_s7 = inlined_call_operand.vmem [shape: f32[32,5], index: 7, kind: input, shape index: {}]   ;;  %s3427_s8 = inlined_call_operand.vmem [shape: f32[1,5], index: 8, kind: input, shape index: {}]   ;;  %s3428_s9 = inlined_call_operand.hbm [shape: f32[8,5], index: 9, kind: output, shape index: {}]  }
   0x1   :  { %v39_v0 = vld [vmem:[%s3419_s0] sm:$0xff]  ;;  %2779 = vset.pattern.permute.xlu0 %v2908_v2  ;;  %2662 = vmatprep.subr.bf16.mxu1 %v2909_v3  ;;  %v322_v4 = vld [vmem:[%s3422_s3 + $0x8] sm:$0xff]  ;;  %v323_v5 = vld [vmem:[%s3422_s3 + $0x10] sm:$0xff]  ;;  %v2911_v8 = vmov 0.0  }
   0x2   :  { %v321_v1 = vld [vmem:[%s3422_s3] sm:$0xff]  ;;  %v324_v6 = vld [vmem:[%s3422_s3 + $0x18] sm:$0xff]  ;;  %58 = vperm.xlu0 %2779, %v39_v0   ;;  %2440 = vmatprep.mubr.msk.f32.mxu1 %vm2910_vm1, %v2911_v8  ;;  %38 = vst.msk [vmem:[#allocation2] sm:$0xff] %vm37_vm0, %v2911_v8  ;;  %v154_v10 = vld [vmem:[%s3420_s1 + $0x8] sm:$0xff] }
   0x3   :  { %v2983_v7 = vpack.c.bf16 %v322_v4, %v321_v1  ;;  %v153_v9 = vld [vmem:[%s3420_s1] sm:$0xff]  ;;  %v155_v11 = vld [vmem:[%s3420_s1 + $0x10] sm:$0xff]  ;;  %v40_v12 = vld [vmem:[%s3419_s0 + $0x8] sm:$0xff]  ;;  %2780 = vset.pattern.permute.xlu1 %v2908_v2  ;;  %v3005_v15 = vpack.c.bf16 %v324_v6, %v323_v5 }
   0x4   :  { %v2630_v13 = vpack.c.bf16 %v154_v10, %v153_v9  ;;  %v156_v14 = vld [vmem:[%s3420_s1 + $0x18] sm:$0xff]  ;;  %v157_v17 = vld [vmem:[%s3420_s1 + $0x20] sm:$0xff]  ;;  %v158_v18 = vld [vmem:[%s3420_s1 + $0x28] sm:$0xff] }
   0x5   :  { %2664 = vmatpush3.bf16.msra.mxu1 %v2983_v7  ;;  %v2634_v16 = vpack.c.bf16 %v156_v14, %v155_v11  ;;  %v2638_v19 = vpack.c.bf16 %v158_v18, %v157_v17  ;;  %v2218_v20 = vld [vmem:[%s3423_s4] ss:$0 sm:$0xff] }
   0x6   :  { %2665 = vmatprep.subr.bf16.mxu1 %v2909_v3  ;;  %2631 = vmatprep.subr.bf16.mxu0 %v2630_v13 }
   0x7   :  { %61 = vperm.xlu0 %2779, %v40_v12   ;;  %2633 = vmatpush3.bf16.msra.mxu0 %v2630_v13 }
   0x8   :  { %2635 = vmatprep.subr.bf16.mxu0 %v2634_v16 }
   0x9   :  { %14 = vsyncpa [#allocation4], 0  ;;  %2667 = vmatpush3.bf16.msra.mxu1 %v3005_v15  ;;  %v159_v21 = vld [vmem:[%s3420_s1 + $0x30] sm:$0xff]  ;;  %v160_v22 = vld [vmem:[%s3420_s1 + $0x38] sm:$0xff]  ;;  %s2912_s17 = smov 64   ;;  %v55_v37 = vlaneseq  ;;  %v2913_v40 = vmov 1.0  }
   0xa   :  { %413 = vrot.lane.b32.xlu1 %v2218_v20, %s2912_s17  ;;  %v3025_v23 = vld [vmem:[#allocation2] sm:$0xff]  ;;  %2668 = vmatprep.subr.bf16.mxu1 %v2909_v3  ;;  %v2642_v24 = vpack.c.bf16 %v160_v22, %v159_v21  ;;  %v162_v26 = vld [vmem:[%s3420_s1 + $0x48] sm:$0xff]  ;;  %v163_v28 = vld [vmem:[%s3420_s1 + $0x50] sm:$0xff]  ;;  %s2914_s12 = smov 32   ;;  %s2915_s13 = smov 96  }
   0xb   :  { %2637 = vmatpush3.bf16.msra.mxu0 %v2634_v16  ;;  %v161_v25 = vld [vmem:[%s3420_s1 + $0x40] sm:$0xff]  ;;  %v164_v29 = vld [vmem:[%s3420_s1 + $0x58] sm:$0xff]  ;;  %v166_v32 = vld [vmem:[%s3420_s1 + $0x68] sm:$0xff]  ;;  %v3061_v38 = vand.u32 127, %v55_v37 }
   0xc   :  { %2441 = vmatmul.mubr.msk.f32.vlgmr.msra.gmra.mrb[0].mxu1 %vm37_vm0, %v3025_v23  ;;  %2639 = vmatprep.subr.bf16.mxu0 %v2638_v19  ;;  %v2646_v27 = vpack.c.bf16 %v162_v26, %v161_v25  ;;  %v2650_v30 = vpack.c.bf16 %v164_v29, %v163_v28  ;;  %v165_v31 = vld [vmem:[%s3420_s1 + $0x60] sm:$0xff]  ;;  %v167_v34 = vld [vmem:[%s3420_s1 + $0x70] sm:$0xff]  ;;  %v168_v35 = vld [vmem:[%s3420_s1 + $0x78] sm:$0xff] }
   0xd   :  { %2670 = vmatpush3.bf16.msra.mxu1 %v2983_v7  ;;  %2451 = vmatprep.mubr.msk.f32.mxu1 %vm2910_vm1, %v2911_v8  ;;  %v2654_v33 = vpack.c.bf16 %v166_v32, %v165_v31  ;;  %v2658_v36 = vpack.c.bf16 %v168_v35, %v167_v34  ;;  %v3078_v46 = vld [vmem:[%s3421_s2] ss:$0 sm:$0xff]  ;;  %v41_v21 = vld [vmem:[%s3419_s0 + $0x10] sm:$0xff] }
   0xe   :  { %2671 = vmatprep.subr.bf16.mxu1 %v2909_v3 }
   0xf   :  { %2641 = vmatpush3.bf16.msra.mxu0 %v2638_v19 }
  0x10   :  { %2643 = vmatprep.subr.bf16.mxu0 %v2642_v24 }
  0x11   :  { %2673 = vmatpush3.bf16.msra.mxu1 %v3005_v15 }
  0x12   :  { %2674 = vmatprep.subr.bf16.mxu1 %v2909_v3 }
  0x13   :  { %2645 = vmatpush3.bf16.msra.mxu0 %v2642_v24 }
  0x14   :  { %2647 = vmatprep.subr.bf16.mxu0 %v2646_v27 }
  0x17   :  { %2649 = vmatpush3.bf16.msra.mxu0 %v2646_v27  ;;  %v42_v27 = vld [vmem:[%s3419_s0 + $0x18] sm:$0xff] }
  0x18   :  { %2651 = vmatprep.subr.bf16.mxu0 %v2650_v30 }
  0x1b   :  { %2653 = vmatpush3.bf16.msra.mxu0 %v2650_v30 }
  0x1c   :  { %2655 = vmatprep.subr.bf16.mxu0 %v2654_v33 }
  0x1f   :  { %2657 = vmatpush3.bf16.msra.mxu0 %v2654_v33 }
  0x20   :  { %2659 = vmatprep.subr.bf16.mxu0 %v2658_v36 }
  0x23   :  { %2661 = vmatpush3.bf16.msra.mxu0 %v2658_v36 }
  0x24   :  { %2704 = vmatprep.subr.bf16.mxu0 %v2909_v3 }
  0x7c   :  { %v3071_v42 = vpop.permute.xlu1 %413 }
  0x81   :  { %v59_v39 = vpop.permute.xlu0 %58 }
  0x82   :  { %vm105_vm2 = vcmp.eq.s32.totalorder %v3061_v38, %v59_v39 }
  0x83   :  { %2408 = vmatprep.mubr.msk.f32.mxu0 %vm105_vm2, %v2913_v40 }
  0x86   :  { %v62_v41 = vpop.permute.xlu0 %61 }
  0x87   :  { %vm106_vm3 = vcmp.eq.s32.totalorder %v3061_v38, %v62_v41 }
  0x88   :  { %2409 = vmatmul.mubr.msk.f32.vlgmr.msra.gmra.mrb[0].mxu0 %vm106_vm3, %v2913_v40 }
  0x89   :  { %2706 = vmatpush3.bf16.msra.mxu0 %v2983_v7 }
  0x8a   :  { %2707 = vmatprep.subr.bf16.mxu0 %v2909_v3 }
  0x8d   :  { %2709 = vmatpush3.bf16.msra.mxu0 %v3005_v15 }
  0x8e   :  { %2716 = vmatprep.subr.bf16.mxu0 %v2909_v3 }
  0xdf   :  { %v397_v43 = vpop.f32.mrb[0].mxu1 }
  0xe0   :  { %v2442_v44 = vpop.f32.mrb[1].mxu1  ;;  %v416_v45 = vadd.f32 %v3071_v42, %v397_v43 }
  0xe2   :  { %418 = vrot.lane.b32.xlu1 %v416_v45, %s2912_s17 }
 0x154   :  { %v419_v54 = vpop.permute.xlu1 %418 }
 0x15b   :  { %v2410_v47 = vpop.f32.mrb[0].mxu0 }
 0x15c   :  { %v242_v48 = vpop.f32.mrb[1].mxu0  ;;  %v248_v9 = vadd.f32 %v2410_v47, %v3078_v46 }
 0x15d   :  { %v243_v49 = vadd.f32 %v3078_v46, %v242_v48 }
 0x15f   :  { %v401_v50 = vadd.f32 %v397_v43, %v243_v49 }
 0x161   :  { %v2217_v51 = vmul.f32 -1.442695, %v401_v50 }
 0x163   :  { %2781 = vpow2.f32 %v2217_v51 }
 0x16d   :  { %v2782_v52 = vpop.eup %2781 }
 0x16e   :  { %v405_v53 = vadd.f32 1.0, %v2782_v52 }
 0x170   :  { %2783 = vrcp.f32 %v405_v53 }
 0x17a   :  { %v2784_v55 = vpop.eup %2783 }
 0x17b   :  { %v421_v56 = vmul.f32 %v2784_v55, %v419_v54  ;;  %v428_v61 = vsub.f32 1.0, %v2784_v55 }
 0x17d   :  { %423 = vrot.lane.b32.xlu0 %v421_v56, %s2912_s17 }
 0x181   :  { %434 = vrot.lane.b32.xlu0 %v3025_v23, %s2914_s12 }
 0x1ef   :  { %v424_v57 = vpop.permute.xlu0 %423 }
 0x1f0   :  { %v426_v58 = vadd.f32 %v424_v57, %v243_v49 }
 0x1f2   :  { %2785 = vtanh.f32 %v426_v58 }
 0x1f3   :  { %v435_v60 = vpop.permute.xlu0 %434 }
 0x1f4   :  { %v437_v63 = vmul.f32 %v2784_v55, %v435_v60 }
 0x1fc   :  { %v2786_v59 = vpop.eup %2785 }
 0x1fd   :  { %430 = vrot.lane.b32.xlu1 %v2786_v59, %s2915_s13 }
 0x26f   :  { %v431_v62 = vpop.permute.xlu1 %430 }
 0x270   :  { %v433_v0 = vmul.f32 %v431_v62, %v428_v61 }
 0x272   :  { %v438_v1 = vadd.f32 %v437_v63, %v433_v0 }
 0x274   :  { %440 = vrot.lane.b32.xlu1 %v438_v1, %s2915_s13 }
 0x2e6   :  { %v441_v2 = vpop.permute.xlu1 %440 }
 0x2e7   :  { %2452 = vmatmul.mubr.msk.f32.vlgmr.msra.gmra.mrb[2].mxu1 %vm37_vm0, %v441_v2 }
 0x2e8   :  { %2676 = vmatpush3.bf16.msra.mxu1 %v2983_v7  ;;  %2462 = vmatprep.mubr.msk.f32.mxu1 %vm2910_vm1, %v2911_v8 }
 0x2e9   :  { %2677 = vmatprep.subr.bf16.mxu1 %v2909_v3 }
 0x2ec   :  { %2679 = vmatpush3.bf16.msra.mxu1 %v3005_v15 }
 0x2ed   :  { %2680 = vmatprep.subr.bf16.mxu1 %v2909_v3 }
 0x3ba   :  { %v510_v4 = vpop.f32.mrb[2].mxu1 }
 0x3bb   :  { %v521_v5 = vadd.f32 %v510_v4, %v3071_v42  ;;  %v2453_v6 = vpop.f32.mrb[3].mxu1  ;;  %v514_v10 = vadd.f32 %v510_v4, %v248_v9 }
 0x3bd   :  { %523 = vrot.lane.b32.xlu0 %v521_v5, %s2912_s17  ;;  %v2220_v11 = vmul.f32 -1.442695, %v514_v10  ;;  %v43_v10 = vld [vmem:[%s3419_s0 + $0x20] sm:$0xff] }
 0x3bf   :  { %2787 = vpow2.f32 %v2220_v11 }
 0x3c9   :  { %v2788_v12 = vpop.eup %2787 }
 0x3ca   :  { %v518_v13 = vadd.f32 1.0, %v2788_v12 }
 0x3cc   :  { %2789 = vrcp.f32 %v518_v13 }
 0x3d6   :  { %v2790_v14 = vpop.eup %2789 }
 0x3d7   :  { %v533_v22 = vsub.f32 1.0, %v2790_v14  ;;  %v539_v24 = vmul.f32 %v2790_v14, %v438_v1 }
 0x42f   :  { %v524_v16 = vpop.permute.xlu0 %523 }
 0x430   :  { %v526_v17 = vmul.f32 %v2790_v14, %v524_v16 }
 0x432   :  { %528 = vrot.lane.b32.xlu1 %v526_v17, %s2912_s17  ;;  %v44_v17 = vld [vmem:[%s3419_s0 + $0x28] sm:$0xff] }
 0x4a4   :  { %v529_v18 = vpop.permute.xlu1 %528 }
 0x4a5   :  { %v531_v19 = vadd.f32 %v529_v18, %v248_v9 }
 0x4a7   :  { %2791 = vtanh.f32 %v531_v19 }
 0x4b1   :  { %v2792_v20 = vpop.eup %2791 }
 0x4b2   :  { %535 = vrot.lane.b32.xlu0 %v2792_v20, %s2915_s13 }
 0x4b6   :  { %64 = vperm.xlu0 %2779, %v41_v21  }
 0x524   :  { %v536_v23 = vpop.permute.xlu0 %535 }
 0x525   :  { %v538_v25 = vmul.f32 %v536_v23, %v533_v22 }
 0x527   :  { %v540_v26 = vadd.f32 %v539_v24, %v538_v25 }
 0x529   :  { %542 = vrot.lane.b32.xlu1 %v540_v26, %s2915_s13 }
 0x52d   :  { %67 = vperm.xlu1 %2780, %v42_v27  }
 0x535   :  { %v65_v28 = vpop.permute.xlu0 %64 }
 0x536   :  { %vm107_vm4 = vcmp.eq.s32.totalorder %v3061_v38, %v65_v28 }
 0x537   :  { %2411 = vmatprep.mubr.msk.f32.mxu0 %vm107_vm4, %v2913_v40 }
 0x59b   :  { %v543_v29 = vpop.permute.xlu1 %542 }
 0x59c   :  { %2463 = vmatmul.mubr.msk.f32.vlgmr.msra.gmra.mrb[4].mxu1 %vm37_vm0, %v543_v29 }
 0x59d   :  { %2682 = vmatpush3.bf16.msra.mxu1 %v2983_v7  ;;  %2473 = vmatprep.mubr.msk.f32.mxu1 %vm2910_vm1, %v2911_v8 }
 0x59e   :  { %2683 = vmatprep.subr.bf16.mxu1 %v2909_v3 }
 0x5a1   :  { %2685 = vmatpush3.bf16.msra.mxu1 %v3005_v15 }
 0x5a2   :  { %2686 = vmatprep.subr.bf16.mxu1 %v2909_v3 }
 0x5ac   :  { %v68_v30 = vpop.permute.xlu1 %67 }
 0x5ad   :  { %vm108_vm5 = vcmp.eq.s32.totalorder %v3061_v38, %v68_v30 }
 0x5ae   :  { %2412 = vmatmul.mubr.msk.f32.gmra.mrb[2].mxu0 %vm108_vm5, %v2913_v40  ;;  %vm2156_vm5 = vcmask 39936  }
 0x66f   :  { %v612_v31 = vpop.f32.mrb[4].mxu1 }
 0x670   :  { %v623_v32 = vadd.f32 %v612_v31, %v3071_v42  ;;  %v2464_v33 = vpop.f32.mrb[5].mxu1 }
 0x672   :  { %625 = vrot.lane.b32.xlu0 %v623_v32, %s2912_s17 }
 0x681   :  { %v2413_v34 = vpop.f32.mrb[2].mxu0 }
 0x682   :  { %v252_v35 = vpop.f32.mrb[3].mxu0  ;;  %v258_v60 = vadd.f32 %v2413_v34, %v3078_v46 }
 0x683   :  { %v253_v36 = vadd.f32 %v3078_v46, %v252_v35 }
 0x685   :  { %v616_v37 = vadd.f32 %v612_v31, %v253_v36 }
 0x687   :  { %v2222_v39 = vmul.f32 -1.442695, %v616_v37 }
 0x689   :  { %2793 = vpow2.f32 %v2222_v39 }
 0x693   :  { %v2794_v41 = vpop.eup %2793 }
 0x694   :  { %v620_v43 = vadd.f32 1.0, %v2794_v41 }
 0x696   :  { %2795 = vrcp.f32 %v620_v43 }
 0x6a0   :  { %v2796_v44 = vpop.eup %2795 }
 0x6a1   :  { %v635_v51 = vsub.f32 1.0, %v2796_v44  ;;  %v641_v53 = vmul.f32 %v2796_v44, %v540_v26 }
 0x6e4   :  { %v626_v45 = vpop.permute.xlu0 %625 }
 0x6e5   :  { %v628_v47 = vmul.f32 %v2796_v44, %v626_v45 }
 0x6e7   :  { %630 = vrot.lane.b32.xlu1 %v628_v47, %s2912_s17 }
 0x759   :  { %v631_v48 = vpop.permute.xlu1 %630 }
 0x75a   :  { %v633_v49 = vadd.f32 %v631_v48, %v253_v36 }
 0x75c   :  { %2797 = vtanh.f32 %v633_v49 }
 0x766   :  { %v2798_v50 = vpop.eup %2797 }
 0x767   :  { %637 = vrot.lane.b32.xlu0 %v2798_v50, %s2915_s13 }
 0x7d9   :  { %v638_v52 = vpop.permute.xlu0 %637 }
 0x7da   :  { %v640_v54 = vmul.f32 %v638_v52, %v635_v51 }
 0x7dc   :  { %v642_v55 = vadd.f32 %v641_v53, %v640_v54 }
 0x7de   :  { %644 = vrot.lane.b32.xlu1 %v642_v55, %s2915_s13 }
 0x850   :  { %v645_v56 = vpop.permute.xlu1 %644 }
 0x851   :  { %2474 = vmatmul.mubr.msk.f32.vlgmr.msra.gmra.mrb[6].mxu1 %vm37_vm0, %v645_v56 }
 0x852   :  { %2688 = vmatpush3.bf16.msra.mxu1 %v2983_v7  ;;  %2484 = vmatprep.mubr.msk.f32.mxu1 %vm2910_vm1, %v2911_v8 }
 0x853   :  { %2689 = vmatprep.subr.bf16.mxu1 %v2909_v3 }
 0x856   :  { %2691 = vmatpush3.bf16.msra.mxu1 %v3005_v15 }
 0x857   :  { %2692 = vmatprep.subr.bf16.mxu1 %v2909_v3 }
 0x924   :  { %v714_v57 = vpop.f32.mrb[6].mxu1 }
 0x925   :  { %v725_v58 = vadd.f32 %v714_v57, %v3071_v42  ;;  %v2475_v59 = vpop.f32.mrb[7].mxu1  ;;  %v718_v61 = vadd.f32 %v714_v57, %v258_v60 }
 0x927   :  { %727 = vrot.lane.b32.xlu0 %v725_v58, %s2912_s17  ;;  %v2224_v62 = vmul.f32 -1.442695, %v718_v61  ;;  %v45_v61 = vld [vmem:[%s3419_s0 + $0x30] sm:$0xff] }
 0x929   :  { %2799 = vpow2.f32 %v2224_v62 }
 0x933   :  { %v2800_v63 = vpop.eup %2799 }
 0x934   :  { %v722_v0 = vadd.f32 1.0, %v2800_v63 }
 0x936   :  { %2801 = vrcp.f32 %v722_v0 }
 0x940   :  { %v2802_v1 = vpop.eup %2801 }
 0x941   :  { %v737_v11 = vsub.f32 1.0, %v2802_v1  ;;  %v743_v13 = vmul.f32 %v2802_v1, %v642_v55 }
 0x999   :  { %v728_v2 = vpop.permute.xlu0 %727 }
 0x99a   :  { %v730_v4 = vmul.f32 %v2802_v1, %v728_v2 }
 0x99c   :  { %732 = vrot.lane.b32.xlu1 %v730_v4, %s2912_s17  ;;  %v46_v4 = vld [vmem:[%s3419_s0 + $0x38] sm:$0xff] }
 0xa0e   :  { %v733_v5 = vpop.permute.xlu1 %732 }
 0xa0f   :  { %v735_v6 = vadd.f32 %v733_v5, %v258_v60 }
 0xa11   :  { %2803 = vtanh.f32 %v735_v6 }
 0xa1b   :  { %v2804_v9 = vpop.eup %2803 }
 0xa1c   :  { %739 = vrot.lane.b32.xlu0 %v2804_v9, %s2915_s13 }
 0xa20   :  { %70 = vperm.xlu0 %2779, %v43_v10  }
 0xa8e   :  { %v740_v12 = vpop.permute.xlu0 %739 }
 0xa8f   :  { %v742_v14 = vmul.f32 %v740_v12, %v737_v11 }
 0xa91   :  { %v744_v16 = vadd.f32 %v743_v13, %v742_v14 }
 0xa93   :  { %746 = vrot.lane.b32.xlu1 %v744_v16, %s2915_s13 }
 0xa97   :  { %73 = vperm.xlu1 %2780, %v44_v17  }
 0xa9f   :  { %v71_v18 = vpop.permute.xlu0 %70 }
 0xaa0   :  { %vm109_vm6 = vcmp.eq.s32.totalorder %v3061_v38, %v71_v18 }
 0xaa1   :  { %2414 = vmatprep.mubr.msk.f32.mxu0 %vm109_vm6, %v2913_v40 }
 0xb05   :  { %v747_v19 = vpop.permute.xlu1 %746 }
 0xb06   :  { %2485 = vmatmul.mubr.msk.f32.vlgmr.msra.gmra.mrb[8].mxu1 %vm37_vm0, %v747_v19 }
 0xb07   :  { %2694 = vmatpush3.bf16.msra.mxu1 %v2983_v7  ;;  %2495 = vmatprep.mubr.msk.f32.mxu1 %vm2910_vm1, %v2911_v8 }
 0xb08   :  { %2695 = vmatprep.subr.bf16.mxu1 %v2909_v3 }
 0xb0b   :  { %2697 = vmatpush3.bf16.msra.mxu1 %v3005_v15 }
 0xb0c   :  { %2698 = vmatprep.subr.bf16.mxu1 %v2909_v3 }
 0xb16   :  { %v74_v20 = vpop.permute.xlu1 %73 }
 0xb17   :  { %vm110_vm7 = vcmp.eq.s32.totalorder %v3061_v38, %v74_v20 }
 0xb18   :  { %2415 = vmatmul.mubr.msk.f32.gmra.mrb[4].mxu0 %vm110_vm7, %v2913_v40 }
 0xbd9   :  { %v816_v21 = vpop.f32.mrb[8].mxu1 }
 0xbda   :  { %v827_v22 = vadd.f32 %v816_v21, %v3071_v42  ;;  %v2486_v23 = vpop.f32.mrb[9].mxu1 }
 0xbdc   :  { %829 = vrot.lane.b32.xlu0 %v827_v22, %s2912_s17 }
 0xbeb   :  { %v2416_v24 = vpop.f32.mrb[4].mxu0 }
 0xbec   :  { %v262_v25 = vpop.f32.mrb[5].mxu0  ;;  %v268_v50 = vadd.f32 %v2416_v24, %v3078_v46  ;;  %v47_v24 = vld [vmem:[%s3419_s0 + $0x40] sm:$0xff] }
 0xbed   :  { %v263_v26 = vadd.f32 %v3078_v46, %v262_v25  ;;  %v49_v25 = vld [vmem:[%s3419_s0 + $0x50] sm:$0xff] }
 0xbef   :  { %v820_v27 = vadd.f32 %v816_v21, %v263_v26 }
 0xbf1   :  { %v2226_v28 = vmul.f32 -1.442695, %v820_v27  ;;  %v53_v27 = vld [vmem:[%s3419_s0 + $0x70] sm:$0xff] }
 0xbf3   :  { %2805 = vpow2.f32 %v2226_v28 }
 0xbfd   :  { %v2806_v29 = vpop.eup %2805 }
 0xbfe   :  { %v824_v30 = vadd.f32 1.0, %v2806_v29 }
 0xc00   :  { %2807 = vrcp.f32 %v824_v30 }
 0xc0a   :  { %v2808_v31 = vpop.eup %2807 }
 0xc0b   :  { %v839_v37 = vsub.f32 1.0, %v2808_v31  ;;  %v845_v41 = vmul.f32 %v2808_v31, %v744_v16 }
 0xc4e   :  { %v830_v32 = vpop.permute.xlu0 %829 }
 0xc4f   :  { %v832_v33 = vmul.f32 %v2808_v31, %v830_v32  ;;  %v48_v31 = vld [vmem:[%s3419_s0 + $0x48] sm:$0xff] }
 0xc51   :  { %834 = vrot.lane.b32.xlu1 %v832_v33, %s2912_s17  ;;  %v50_v33 = vld [vmem:[%s3419_s0 + $0x58] sm:$0xff] }
 0xcc3   :  { %v835_v34 = vpop.permute.xlu1 %834 }
 0xcc4   :  { %v837_v35 = vadd.f32 %v835_v34, %v263_v26  ;;  %v51_v26 = vld [vmem:[%s3419_s0 + $0x60] sm:$0xff]  ;;  %v52_v34 = vld [vmem:[%s3419_s0 + $0x68] sm:$0xff] }
 0xcc6   :  { %2809 = vtanh.f32 %v837_v35  ;;  %v54_v35 = vld [vmem:[%s3419_s0 + $0x78] sm:$0xff] }
 0xcd0   :  { %v2810_v36 = vpop.eup %2809 }
 0xcd1   :  { %841 = vrot.lane.b32.xlu0 %v2810_v36, %s2915_s13 }
 0xd43   :  { %v842_v39 = vpop.permute.xlu0 %841 }
 0xd44   :  { %v844_v43 = vmul.f32 %v842_v39, %v839_v37 }
 0xd46   :  { %v846_v44 = vadd.f32 %v845_v41, %v844_v43 }
 0xd48   :  { %848 = vrot.lane.b32.xlu1 %v846_v44, %s2915_s13 }
 0xdba   :  { %v849_v45 = vpop.permute.xlu1 %848 }
 0xdbb   :  { %2496 = vmatmul.mubr.msk.f32.vlgmr.msra.gmra.mrb[10].mxu1 %vm37_vm0, %v849_v45 }
 0xdbc   :  { %2700 = vmatpush3.bf16.msra.mxu1 %v2983_v7  ;;  %2506 = vmatprep.mubr.msk.f32.mxu1 %vm2910_vm1, %v2911_v8 }
 0xdbd   :  { %2701 = vmatprep.subr.bf16.mxu1 %v2909_v3 }
 0xdc0   :  { %2703 = vmatpush3.bf16.msra.mxu1 %v3005_v15 }
 0xdc1   :  { %2710 = vmatprep.subr.bf16.mxu1 %v2909_v3 }
 0xe8e   :  { %v918_v47 = vpop.f32.mrb[10].mxu1 }
 0xe8f   :  { %v929_v48 = vadd.f32 %v918_v47, %v3071_v42  ;;  %v2497_v49 = vpop.f32.mrb[11].mxu1  ;;  %v922_v51 = vadd.f32 %v918_v47, %v268_v50 }
 0xe91   :  { %931 = vrot.lane.b32.xlu0 %v929_v48, %s2912_s17  ;;  %v2228_v52 = vmul.f32 -1.442695, %v922_v51 }
 0xe93   :  { %2811 = vpow2.f32 %v2228_v52 }
 0xe9d   :  { %v2812_v53 = vpop.eup %2811 }
 0xe9e   :  { %v926_v54 = vadd.f32 1.0, %v2812_v53 }
 0xea0   :  { %2813 = vrcp.f32 %v926_v54 }
 0xeaa   :  { %v2814_v55 = vpop.eup %2813 }
 0xeab   :  { %v941_v62 = vsub.f32 1.0, %v2814_v55  ;;  %v947_v0 = vmul.f32 %v2814_v55, %v846_v44 }
 0xf03   :  { %v932_v56 = vpop.permute.xlu0 %931 }
 0xf04   :  { %v934_v57 = vmul.f32 %v2814_v55, %v932_v56 }
 0xf06   :  { %936 = vrot.lane.b32.xlu1 %v934_v57, %s2912_s17 }
 0xf78   :  { %v937_v58 = vpop.permute.xlu1 %936 }
 0xf79   :  { %v939_v59 = vadd.f32 %v937_v58, %v268_v50 }
 0xf7b   :  { %2815 = vtanh.f32 %v939_v59 }
 0xf85   :  { %v2816_v60 = vpop.eup %2815 }
 0xf86   :  { %943 = vrot.lane.b32.xlu0 %v2816_v60, %s2915_s13 }
 0xf8a   :  { %76 = vperm.xlu0 %2779, %v45_v61  }
 0xff8   :  { %v944_v63 = vpop.permute.xlu0 %943 }
 0xff9   :  { %v946_v1 = vmul.f32 %v944_v63, %v941_v62 }
 0xffb   :  { %v948_v2 = vadd.f32 %v947_v0, %v946_v1 }
 0xffd   :  { %950 = vrot.lane.b32.xlu1 %v948_v2, %s2915_s13 }
0x1001   :  { %79 = vperm.xlu1 %2780, %v46_v4  }
0x1009   :  { %v77_v5 = vpop.permute.xlu0 %76 }
0x100a   :  { %vm111_vm8 = vcmp.eq.s32.totalorder %v3061_v38, %v77_v5 }
0x100b   :  { %2417 = vmatprep.mubr.msk.f32.mxu0 %vm111_vm8, %v2913_v40 }
0x106f   :  { %v951_v6 = vpop.permute.xlu1 %950 }
0x1070   :  { %2507 = vmatmul.mubr.msk.f32.vlgmr.msra.gmra.mrb[12].mxu1 %vm37_vm0, %v951_v6 }
0x1071   :  { %2712 = vmatpush3.bf16.msra.mxu1 %v2983_v7  ;;  %2528 = vmatprep.mubr.msk.f32.mxu1 %vm2910_vm1, %v2911_v8 }
0x1072   :  { %2713 = vmatprep.subr.bf16.mxu1 %v2909_v3 }
0x1075   :  { %2715 = vmatpush3.bf16.msra.mxu1 %v3005_v15 }
0x1076   :  { %2722 = vmatprep.subr.bf16.mxu1 %v2909_v3 }
0x1080   :  { %v80_v9 = vpop.permute.xlu1 %79 }
0x1081   :  { %vm112_vm9 = vcmp.eq.s32.totalorder %v3061_v38, %v80_v9 }
0x1082   :  { %2418 = vmatmul.mubr.msk.f32.gmra.mrb[6].mxu0 %vm112_vm9, %v2913_v40 }
0x1143   :  { %v1020_v10 = vpop.f32.mrb[12].mxu1 }
0x1144   :  { %v1031_v11 = vadd.f32 %v1020_v10, %v3071_v42  ;;  %v2508_v12 = vpop.f32.mrb[13].mxu1 }
0x1146   :  { %1033 = vrot.lane.b32.xlu0 %v1031_v11, %s2912_s17 }
0x1155   :  { %v3189_v13 = vpop.f32.mrb[6].mxu0 }
0x1156   :  { %v272_v14 = vpop.f32.mrb[7].mxu0  ;;  %v278_v62 = vadd.f32 %v3189_v13, %v3078_v46 }
0x1157   :  { %v273_v16 = vadd.f32 %v3078_v46, %v272_v14 }
0x1159   :  { %v1024_v17 = vadd.f32 %v1020_v10, %v273_v16 }
0x115b   :  { %v2230_v18 = vmul.f32 -1.442695, %v1024_v17 }
0x115d   :  { %2817 = vpow2.f32 %v2230_v18 }
0x1167   :  { %v2818_v19 = vpop.eup %2817 }
0x1168   :  { %v1028_v20 = vadd.f32 1.0, %v2818_v19 }
0x116a   :  { %2819 = vrcp.f32 %v1028_v20 }
0x1174   :  { %v2820_v21 = vpop.eup %2819 }
0x1175   :  { %v1043_v36 = vsub.f32 1.0, %v2820_v21  ;;  %v1049_v39 = vmul.f32 %v2820_v21, %v948_v2 }
0x11b8   :  { %v1034_v22 = vpop.permute.xlu0 %1033 }
0x11b9   :  { %v1036_v23 = vmul.f32 %v2820_v21, %v1034_v22 }
0x11bb   :  { %1038 = vrot.lane.b32.xlu1 %v1036_v23, %s2912_s17 }
0x11bf   :  { %82 = vperm.xlu1 %2780, %v47_v24  }
0x11c3   :  { %88 = vperm.xlu1 %2780, %v49_v25  }
0x11c7   :  { %94 = vperm.xlu1 %2780, %v51_v26  }
0x11cb   :  { %100 = vperm.xlu1 %2780, %v53_v27  }
0x122d   :  { %v1039_v28 = vpop.permute.xlu1 %1038 }
0x122e   :  { %v1041_v29 = vadd.f32 %v1039_v28, %v273_v16 }
0x1230   :  { %2821 = vtanh.f32 %v1041_v29 }
0x123a   :  { %v2822_v30 = vpop.eup %2821 }
0x123b   :  { %1045 = vrot.lane.b32.xlu0 %v2822_v30, %s2915_s13 }
0x123e   :  { %v83_v32 = vpop.permute.xlu1 %82 }
0x123f   :  { %vm113_vm10 = vcmp.eq.s32.totalorder %v3061_v38, %v83_v32  ;;  %85 = vperm.xlu0 %2779, %v48_v31  }
0x1240   :  { %2420 = vmatprep.mubr.msk.f32.mxu0 %vm113_vm10, %v2913_v40 }
0x1242   :  { %v89_v44 = vpop.permute.xlu1 %88 }
0x1243   :  { %91 = vperm.xlu0 %2779, %v50_v33   ;;  %vm115_vm12 = vcmp.eq.s32.totalorder %v3061_v38, %v89_v44 }
0x1246   :  { %v95_v47 = vpop.permute.xlu1 %94 }
0x1247   :  { %97 = vperm.xlu0 %2779, %v52_v34   ;;  %vm117_vm14 = vcmp.eq.s32.totalorder %v3061_v38, %v95_v47 }
0x124a   :  { %v101_v49 = vpop.permute.xlu1 %100 }
0x124b   :  { %103 = vperm.xlu0 %2779, %v54_v35   ;;  %vm119_vm2 = vcmp.eq.s32.totalorder %v3061_v38, %v101_v49 }
0x12ad   :  { %v1046_v37 = vpop.permute.xlu0 %1045 }
0x12ae   :  { %v1048_v41 = vmul.f32 %v1046_v37, %v1043_v36 }
0x12b0   :  { %v1050_v43 = vadd.f32 %v1049_v39, %v1048_v41 }
0x12b2   :  { %1052 = vrot.lane.b32.xlu1 %v1050_v43, %s2915_s13 }
0x12be   :  { %v86_v45 = vpop.permute.xlu0 %85 }
0x12bf   :  { %vm114_vm11 = vcmp.eq.s32.totalorder %v3061_v38, %v86_v45 }
0x12c0   :  { %2421 = vmatmul.mubr.msk.f32.gmra.mrb[8].mxu0 %vm114_vm11, %v2913_v40 }
0x12c1   :  { %2423 = vmatprep.mubr.msk.f32.mxu0 %vm115_vm12, %v2913_v40 }
0x12c2   :  { %v92_v48 = vpop.permute.xlu0 %91 }
0x12c3   :  { %vm116_vm13 = vcmp.eq.s32.totalorder %v3061_v38, %v92_v48 }
0x12c4   :  { %2424 = vmatmul.mubr.msk.f32.gmra.mrb[10].mxu0 %vm116_vm13, %v2913_v40 }
0x12c5   :  { %2426 = vmatprep.mubr.msk.f32.mxu0 %vm117_vm14, %v2913_v40 }
0x12c6   :  { %v98_v50 = vpop.permute.xlu0 %97 }
0x12c7   :  { %vm118_vm15 = vcmp.eq.s32.totalorder %v3061_v38, %v98_v50 }
0x12c8   :  { %2427 = vmatmul.mubr.msk.f32.gmra.mrb[12].mxu0 %vm118_vm15, %v2913_v40 }
0x12c9   :  { %2429 = vmatprep.mubr.msk.f32.mxu0 %vm119_vm2, %v2913_v40 }
0x12ca   :  { %v104_v51 = vpop.permute.xlu0 %103 }
0x12cb   :  { %vm120_vm3 = vcmp.eq.s32.totalorder %v3061_v38, %v104_v51 }
0x12cc   :  { %2430 = vmatmul.mubr.msk.f32.gmra.mrb[14].mxu0 %vm120_vm3, %v2913_v40 }
0x12cd   :  { %2517 = vmatprep.mubr.msk.f32.mxu0 %vm2910_vm1, %v2911_v8 }
0x1324   :  { %v1053_v52 = vpop.permute.xlu1 %1052 }
0x1325   :  { %2518 = vmatmul.mubr.msk.f32.vlgmr.msra.gmra.mrb[16].mxu0 %vm37_vm0, %v1053_v52 }
0x1326   :  { %2718 = vmatpush3.bf16.msra.mxu0 %v2983_v7  ;;  %2539 = vmatprep.mubr.msk.f32.mxu0 %vm2910_vm1, %v2911_v8 }
0x1327   :  { %2719 = vmatprep.subr.bf16.mxu0 %v2909_v3 }
0x132a   :  { %2721 = vmatpush3.bf16.msra.mxu0 %v3005_v15 }
0x132b   :  { %2728 = vmatprep.subr.bf16.mxu0 %v2909_v3 }
0x1393   :  { %v3244_v38 = vpop.f32.mrb[8].mxu0 }
0x1394   :  { %v282_v40 = vpop.f32.mrb[9].mxu0  ;;  %v288_v45 = vadd.f32 %v3244_v38, %v3078_v46 }
0x1395   :  { %v283_v22 = vadd.f32 %v3078_v46, %v282_v40 }
0x1397   :  { %v3246_v53 = vpop.f32.mrb[10].mxu0 }
0x1398   :  { %v3248_v54 = vpop.f32.mrb[11].mxu0 }
0x139b   :  { %v3250_v55 = vpop.f32.mrb[12].mxu0 }
0x139c   :  { %v3252_v56 = vpop.f32.mrb[13].mxu0 }
0x139f   :  { %v3254_v57 = vpop.f32.mrb[14].mxu0 }
0x13a0   :  { %v3256_v58 = vpop.f32.mrb[15].mxu0 }
0x13f8   :  { %v1122_v59 = vpop.f32.mrb[16].mxu0 }
0x13f9   :  { %v1133_v60 = vadd.f32 %v1122_v59, %v3071_v42  ;;  %v2519_v61 = vpop.f32.mrb[17].mxu0  ;;  %v1126_v63 = vadd.f32 %v1122_v59, %v278_v62 }
0x13fb   :  { %1135 = vrot.lane.b32.xlu0 %v1133_v60, %s2912_s17  ;;  %v2232_v0 = vmul.f32 -1.442695, %v1126_v63 }
0x13fd   :  { %2823 = vpow2.f32 %v2232_v0 }
0x1407   :  { %v2824_v1 = vpop.eup %2823 }
0x1408   :  { %v1130_v2 = vadd.f32 1.0, %v2824_v1 }
0x140a   :  { %2825 = vrcp.f32 %v1130_v2 }
0x1414   :  { %v2826_v4 = vpop.eup %2825 }
0x1415   :  { %v1145_v12 = vsub.f32 1.0, %v2826_v4  ;;  %v1151_v13 = vmul.f32 %v2826_v4, %v1050_v43 }
0x146d   :  { %v1136_v5 = vpop.permute.xlu0 %1135 }
0x146e   :  { %v1138_v6 = vmul.f32 %v2826_v4, %v1136_v5 }
0x1470   :  { %1140 = vrot.lane.b32.xlu1 %v1138_v6, %s2912_s17 }
0x14e2   :  { %v1141_v9 = vpop.permute.xlu1 %1140 }
0x14e3   :  { %v1143_v10 = vadd.f32 %v1141_v9, %v278_v62  ;;  %v293_v9 = vadd.f32 %v3078_v46, %v3248_v54 }
0x14e5   :  { %2827 = vtanh.f32 %v1143_v10 }
0x14ef   :  { %v2828_v11 = vpop.eup %2827 }
0x14f0   :  { %1147 = vrot.lane.b32.xlu0 %v2828_v11, %s2915_s13 }
0x1562   :  { %v1148_v14 = vpop.permute.xlu0 %1147 }
0x1563   :  { %v1150_v16 = vmul.f32 %v1148_v14, %v1145_v12 }
0x1565   :  { %v1152_v17 = vadd.f32 %v1151_v13, %v1150_v16 }
0x1567   :  { %1154 = vrot.lane.b32.xlu1 %v1152_v17, %s2915_s13 }
0x15d9   :  { %v1155_v18 = vpop.permute.xlu1 %1154 }
0x15da   :  { %2529 = vmatmul.mubr.msk.f32.vlgmr.msra.gmra.mrb[14].mxu1 %vm37_vm0, %v1155_v18 }
0x15db   :  { %2724 = vmatpush3.bf16.msra.mxu1 %v2983_v7  ;;  %2550 = vmatprep.mubr.msk.f32.mxu1 %vm2910_vm1, %v2911_v8 }
0x15dc   :  { %2725 = vmatprep.subr.bf16.mxu1 %v2909_v3 }
0x15df   :  { %2727 = vmatpush3.bf16.msra.mxu1 %v3005_v15 }
0x15e0   :  { %2734 = vmatprep.subr.bf16.mxu1 %v2909_v3 }
0x16ad   :  { %v1224_v19 = vpop.f32.mrb[14].mxu1 }
0x16ae   :  { %v1235_v20 = vadd.f32 %v1224_v19, %v3071_v42  ;;  %v2530_v21 = vpop.f32.mrb[15].mxu1  ;;  %v1228_v23 = vadd.f32 %v1224_v19, %v283_v22 }
0x16b0   :  { %1237 = vrot.lane.b32.xlu0 %v1235_v20, %s2912_s17  ;;  %v2234_v24 = vmul.f32 -1.442695, %v1228_v23 }
0x16b2   :  { %2829 = vpow2.f32 %v2234_v24 }
0x16bc   :  { %v2830_v25 = vpop.eup %2829 }
0x16bd   :  { %v1232_v26 = vadd.f32 1.0, %v2830_v25 }
0x16bf   :  { %2831 = vrcp.f32 %v1232_v26 }
0x16c9   :  { %v2832_v27 = vpop.eup %2831 }
0x16ca   :  { %v1247_v33 = vsub.f32 1.0, %v2832_v27  ;;  %v1253_v35 = vmul.f32 %v2832_v27, %v1152_v17 }
0x1722   :  { %v1238_v28 = vpop.permute.xlu0 %1237 }
0x1723   :  { %v1240_v29 = vmul.f32 %v2832_v27, %v1238_v28 }
0x1725   :  { %1242 = vrot.lane.b32.xlu1 %v1240_v29, %s2912_s17  ;;  %v298_v29 = vadd.f32 %v3246_v53, %v3078_v46 }
0x1797   :  { %v1243_v30 = vpop.permute.xlu1 %1242 }
0x1798   :  { %v1245_v31 = vadd.f32 %v1243_v30, %v283_v22 }
0x179a   :  { %2833 = vtanh.f32 %v1245_v31 }
0x17a4   :  { %v2834_v32 = vpop.eup %2833 }
0x17a5   :  { %1249 = vrot.lane.b32.xlu0 %v2834_v32, %s2915_s13 }
0x1817   :  { %v1250_v34 = vpop.permute.xlu0 %1249 }
0x1818   :  { %v1252_v36 = vmul.f32 %v1250_v34, %v1247_v33 }
0x181a   :  { %v1254_v37 = vadd.f32 %v1253_v35, %v1252_v36 }
0x181c   :  { %1256 = vrot.lane.b32.xlu1 %v1254_v37, %s2915_s13 }
0x188e   :  { %v1257_v39 = vpop.permute.xlu1 %1256 }
0x188f   :  { %2540 = vmatmul.mubr.msk.f32.vlgmr.msra.gmra.mrb[18].mxu0 %vm37_vm0, %v1257_v39 }
0x1890   :  { %2730 = vmatpush3.bf16.msra.mxu0 %v2983_v7  ;;  %2561 = vmatprep.mubr.msk.f32.mxu0 %vm2910_vm1, %v2911_v8 }
0x1891   :  { %2731 = vmatprep.subr.bf16.mxu0 %v2909_v3 }
0x1894   :  { %2733 = vmatpush3.bf16.msra.mxu0 %v3005_v15 }
0x1895   :  { %2740 = vmatprep.subr.bf16.mxu0 %v2909_v3 }
0x1962   :  { %v1326_v41 = vpop.f32.mrb[18].mxu0 }
0x1963   :  { %v1337_v43 = vadd.f32 %v1326_v41, %v3071_v42  ;;  %v2541_v44 = vpop.f32.mrb[19].mxu0  ;;  %v1330_v47 = vadd.f32 %v1326_v41, %v288_v45 }
0x1965   :  { %1339 = vrot.lane.b32.xlu0 %v1337_v43, %s2912_s17  ;;  %v2236_v48 = vmul.f32 -1.442695, %v1330_v47 }
0x1967   :  { %2835 = vpow2.f32 %v2236_v48 }
0x1971   :  { %v2836_v49 = vpop.eup %2835 }
0x1972   :  { %v1334_v50 = vadd.f32 1.0, %v2836_v49 }
0x1974   :  { %2837 = vrcp.f32 %v1334_v50 }
0x197e   :  { %v2838_v51 = vpop.eup %2837 }
0x197f   :  { %v1349_v62 = vsub.f32 1.0, %v2838_v51  ;;  %v1355_v38 = vmul.f32 %v2838_v51, %v1254_v37 }
0x19d7   :  { %v1340_v52 = vpop.permute.xlu0 %1339 }
0x19d8   :  { %v1342_v40 = vmul.f32 %v2838_v51, %v1340_v52  ;;  %v303_v52 = vadd.f32 %v3078_v46, %v3252_v56 }
0x19da   :  { %1344 = vrot.lane.b32.xlu1 %v1342_v40, %s2912_s17 }
0x1a4c   :  { %v1345_v59 = vpop.permute.xlu1 %1344 }
0x1a4d   :  { %v1347_v60 = vadd.f32 %v1345_v59, %v288_v45 }
0x1a4f   :  { %2839 = vtanh.f32 %v1347_v60 }
0x1a59   :  { %v2840_v61 = vpop.eup %2839 }
0x1a5a   :  { %1351 = vrot.lane.b32.xlu0 %v2840_v61, %s2915_s13 }
0x1acc   :  { %v1352_v63 = vpop.permute.xlu0 %1351 }
0x1acd   :  { %v1354_v0 = vmul.f32 %v1352_v63, %v1349_v62 }
0x1acf   :  { %v1356_v1 = vadd.f32 %v1355_v38, %v1354_v0 }
0x1ad1   :  { %1358 = vrot.lane.b32.xlu1 %v1356_v1, %s2915_s13 }
0x1b43   :  { %v1359_v2 = vpop.permute.xlu1 %1358 }
0x1b44   :  { %2551 = vmatmul.mubr.msk.f32.vlgmr.msra.gmra.mrb[16].mxu1 %vm37_vm0, %v1359_v2 }
0x1b45   :  { %2736 = vmatpush3.bf16.msra.mxu1 %v2983_v7  ;;  %2572 = vmatprep.mubr.msk.f32.mxu1 %vm2910_vm1, %v2911_v8 }
0x1b46   :  { %2737 = vmatprep.subr.bf16.mxu1 %v2909_v3 }
0x1b49   :  { %2739 = vmatpush3.bf16.msra.mxu1 %v3005_v15 }
0x1b4a   :  { %2746 = vmatprep.subr.bf16.mxu1 %v2909_v3 }
0x1c17   :  { %v1428_v4 = vpop.f32.mrb[16].mxu1 }
0x1c18   :  { %v1439_v5 = vadd.f32 %v1428_v4, %v3071_v42  ;;  %v2552_v6 = vpop.f32.mrb[17].mxu1  ;;  %v1432_v10 = vadd.f32 %v1428_v4, %v293_v9 }
0x1c1a   :  { %1441 = vrot.lane.b32.xlu0 %v1439_v5, %s2912_s17  ;;  %v2238_v11 = vmul.f32 -1.442695, %v1432_v10 }
0x1c1c   :  { %2841 = vpow2.f32 %v2238_v11 }
0x1c26   :  { %v2842_v12 = vpop.eup %2841 }
0x1c27   :  { %v1436_v14 = vadd.f32 1.0, %v2842_v12 }
0x1c29   :  { %2843 = vrcp.f32 %v1436_v14  ;;  %v2883_v14 = vld [vmem:[%s3421_s2] ss:$0 sm:$0xff] }
0x1c33   :  { %v2844_v13 = vpop.eup %2843 }
0x1c34   :  { %v1451_v21 = vsub.f32 1.0, %v2844_v13  ;;  %v1457_v54 = vmul.f32 %v2844_v13, %v1356_v1 }
0x1c8c   :  { %v1442_v16 = vpop.permute.xlu0 %1441 }
0x1c8d   :  { %v1444_v17 = vmul.f32 %v2844_v13, %v1442_v16 }
0x1c8f   :  { %1446 = vrot.lane.b32.xlu1 %v1444_v17, %s2912_s17 }
0x1d01   :  { %v1447_v18 = vpop.permute.xlu1 %1446 }
0x1d02   :  { %v1449_v19 = vadd.f32 %v1447_v18, %v293_v9 }
0x1d04   :  { %2845 = vtanh.f32 %v1449_v19 }
0x1d0e   :  { %v2846_v20 = vpop.eup %2845 }
0x1d0f   :  { %1453 = vrot.lane.b32.xlu0 %v2846_v20, %s2915_s13 }
0x1d81   :  { %v1454_v22 = vpop.permute.xlu0 %1453 }
0x1d82   :  { %v1456_v23 = vmul.f32 %v1454_v22, %v1451_v21 }
0x1d84   :  { %v1458_v24 = vadd.f32 %v1457_v54, %v1456_v23 }
0x1d86   :  { %1460 = vrot.lane.b32.xlu1 %v1458_v24, %s2915_s13 }
0x1df8   :  { %v1461_v25 = vpop.permute.xlu1 %1460 }
0x1df9   :  { %2562 = vmatmul.mubr.msk.f32.vlgmr.msra.gmra.mrb[20].mxu0 %vm37_vm0, %v1461_v25 }
0x1dfa   :  { %2742 = vmatpush3.bf16.msra.mxu0 %v2983_v7  ;;  %2583 = vmatprep.mubr.msk.f32.mxu0 %vm2910_vm1, %v2911_v8 }
0x1dfb   :  { %2743 = vmatprep.subr.bf16.mxu0 %v2909_v3 }
0x1dfe   :  { %2745 = vmatpush3.bf16.msra.mxu0 %v3005_v15 }
0x1dff   :  { %2752 = vmatprep.subr.bf16.mxu0 %v2909_v3 }
0x1ecc   :  { %v1530_v26 = vpop.f32.mrb[20].mxu0 }
0x1ecd   :  { %v1541_v27 = vadd.f32 %v1530_v26, %v3071_v42  ;;  %v2563_v28 = vpop.f32.mrb[21].mxu0  ;;  %v1534_v30 = vadd.f32 %v1530_v26, %v298_v29 }
0x1ecf   :  { %1543 = vrot.lane.b32.xlu0 %v1541_v27, %s2912_s17  ;;  %v2240_v31 = vmul.f32 -1.442695, %v1534_v30 }
0x1ed1   :  { %2847 = vpow2.f32 %v2240_v31  ;;  %v313_v31 = vadd.f32 %v2883_v14, %v3256_v58 }
0x1edb   :  { %v2848_v32 = vpop.eup %2847 }
0x1edc   :  { %v1538_v33 = vadd.f32 1.0, %v2848_v32 }
0x1ede   :  { %2849 = vrcp.f32 %v1538_v33 }
0x1ee8   :  { %v2850_v34 = vpop.eup %2849 }
0x1ee9   :  { %v1553_v43 = vsub.f32 1.0, %v2850_v34  ;;  %v1559_v53 = vmul.f32 %v2850_v34, %v1458_v24 }
0x1f41   :  { %v1544_v35 = vpop.permute.xlu0 %1543 }
0x1f42   :  { %v1546_v36 = vmul.f32 %v2850_v34, %v1544_v35 }
0x1f44   :  { %1548 = vrot.lane.b32.xlu1 %v1546_v36, %s2912_s17 }
0x1fb6   :  { %v1549_v37 = vpop.permute.xlu1 %1548 }
0x1fb7   :  { %v1551_v39 = vadd.f32 %v1549_v37, %v298_v29 }
0x1fb9   :  { %2851 = vtanh.f32 %v1551_v39 }
0x1fc3   :  { %v2852_v41 = vpop.eup %2851 }
0x1fc4   :  { %1555 = vrot.lane.b32.xlu0 %v2852_v41, %s2915_s13 }
0x2036   :  { %v1556_v44 = vpop.permute.xlu0 %1555 }
0x2037   :  { %v1558_v45 = vmul.f32 %v1556_v44, %v1553_v43 }
0x2039   :  { %v1560_v47 = vadd.f32 %v1559_v53, %v1558_v45 }
0x203b   :  { %1562 = vrot.lane.b32.xlu1 %v1560_v47, %s2915_s13 }
0x20ad   :  { %v1563_v48 = vpop.permute.xlu1 %1562 }
0x20ae   :  { %2573 = vmatmul.mubr.msk.f32.vlgmr.msra.gmra.mrb[18].mxu1 %vm37_vm0, %v1563_v48 }
0x20af   :  { %2748 = vmatpush3.bf16.msra.mxu1 %v2983_v7  ;;  %2594 = vmatprep.mubr.msk.f32.mxu1 %vm2910_vm1, %v2911_v8 }
0x20b0   :  { %2749 = vmatprep.subr.bf16.mxu1 %v2909_v3 }
0x20b3   :  { %2751 = vmatpush3.bf16.msra.mxu1 %v3005_v15 }
0x20b4   :  { %2758 = vmatprep.subr.bf16.mxu1 %v2909_v3 }
0x2181   :  { %v1632_v49 = vpop.f32.mrb[18].mxu1 }
0x2182   :  { %v1643_v50 = vadd.f32 %v1632_v49, %v3071_v42  ;;  %v2574_v51 = vpop.f32.mrb[19].mxu1  ;;  %v1636_v40 = vadd.f32 %v1632_v49, %v303_v52 }
0x2184   :  { %1645 = vrot.lane.b32.xlu0 %v1643_v50, %s2912_s17  ;;  %v2242_v59 = vmul.f32 -1.442695, %v1636_v40  ;;  %v318_v40 = vadd.f32 %v2883_v14, %v3254_v57  ;;  %v1983_v57 = vld [vmem:[%s3424_s5] sm:$0xff] }
0x2186   :  { %2853 = vpow2.f32 %v2242_v59 }
0x2190   :  { %v2854_v60 = vpop.eup %2853 }
0x2191   :  { %v1640_v61 = vadd.f32 1.0, %v2854_v60 }
0x2193   :  { %2855 = vrcp.f32 %v1640_v61 }
0x219d   :  { %v2856_v62 = vpop.eup %2855 }
0x219e   :  { %v1655_v4 = vsub.f32 1.0, %v2856_v62  ;;  %v1661_v46 = vmul.f32 %v2856_v62, %v1560_v47 }
0x21f6   :  { %v1646_v63 = vpop.permute.xlu0 %1645 }
0x21f7   :  { %v1648_v38 = vmul.f32 %v2856_v62, %v1646_v63 }
0x21f9   :  { %1650 = vrot.lane.b32.xlu1 %v1648_v38, %s2912_s17 }
0x226b   :  { %v1651_v0 = vpop.permute.xlu1 %1650 }
0x226c   :  { %v1653_v1 = vadd.f32 %v1651_v0, %v303_v52 }
0x226e   :  { %2857 = vtanh.f32 %v1653_v1 }
0x2278   :  { %v2858_v2 = vpop.eup %2857 }
0x2279   :  { %1657 = vrot.lane.b32.xlu0 %v2858_v2, %s2915_s13  ;;  %v1984_v2 = vld [vmem:[%s3424_s5 + $0x8] sm:$0xff] }
0x22eb   :  { %v1658_v5 = vpop.permute.xlu0 %1657 }
0x22ec   :  { %v1660_v56 = vmul.f32 %v1658_v5, %v1655_v4  ;;  %v1985_v4 = vld [vmem:[%s3424_s5 + $0x10] sm:$0xff]  ;;  %v2759_v5 = vpack.c.bf16 %v1984_v2, %v1983_v57 }
0x22ee   :  { %v1662_v6 = vadd.f32 %v1661_v46, %v1660_v56  ;;  %v1986_v46 = vld [vmem:[%s3424_s5 + $0x18] sm:$0xff] }
0x22ef   :  { %v2762_v56 = vpack.c.bf16 %v1986_v46, %v1985_v4 }
0x22f0   :  { %1664 = vrot.lane.b32.xlu1 %v1662_v6, %s2915_s13 }
0x2362   :  { %v1665_v9 = vpop.permute.xlu1 %1664 }
0x2363   :  { %2584 = vmatmul.mubr.msk.f32.vlgmr.msra.gmra.mrb[22].mxu0 %vm37_vm0, %v1665_v9 }
0x2364   :  { %2754 = vmatpush3.bf16.msra.mxu0 %v2983_v7  ;;  %2605 = vmatprep.mubr.msk.f32.mxu0 %vm2910_vm1, %v2911_v8  ;;  %v308_v7 = vadd.f32 %v2883_v14, %v3250_v55 }
0x2365   :  { %2755 = vmatprep.subr.bf16.mxu0 %v2909_v3 }
0x2368   :  { %2757 = vmatpush3.bf16.msra.mxu0 %v3005_v15 }
0x2369   :  { %2764 = vmatprep.subr.bf16.mxu0 %v2909_v3 }
0x2436   :  { %v1734_v10 = vpop.f32.mrb[22].mxu0 }
0x2437   :  { %v1745_v11 = vadd.f32 %v1734_v10, %v3071_v42  ;;  %v2585_v12 = vpop.f32.mrb[23].mxu0  ;;  %v1738_v13 = vadd.f32 %v1734_v10, %v308_v7 }
0x2439   :  { %1747 = vrot.lane.b32.xlu0 %v1745_v11, %s2912_s17  ;;  %v2244_v16 = vmul.f32 -1.442695, %v1738_v13  ;;  %v2072_v13 = vld [vmem:[%s3426_s7] sm:$0xff] }
0x243b   :  { %2859 = vpow2.f32 %v2244_v16  ;;  %v2073_v16 = vld [vmem:[%s3426_s7 + $0x8] sm:$0xff] }
0x2445   :  { %v2860_v17 = vpop.eup %2859 }
0x2446   :  { %v1742_v18 = vadd.f32 1.0, %v2860_v17  ;;  %v2765_v17 = vpack.c.bf16 %v2073_v16, %v2072_v13 }
0x2448   :  { %2861 = vrcp.f32 %v1742_v18 }
0x2452   :  { %v2862_v15 = vpop.eup %2861 }
0x2453   :  { %v1757_v23 = vsub.f32 1.0, %v2862_v15  ;;  %v1763_v55 = vmul.f32 %v2862_v15, %v1662_v6 }
0x24ab   :  { %v1748_v19 = vpop.permute.xlu0 %1747 }
0x24ac   :  { %v1750_v20 = vmul.f32 %v2862_v15, %v1748_v19 }
0x24ae   :  { %1752 = vrot.lane.b32.xlu1 %v1750_v20, %s2912_s17 }
0x2520   :  { %v1753_v21 = vpop.permute.xlu1 %1752 }
0x2521   :  { %v1755_v22 = vadd.f32 %v1753_v21, %v308_v7  ;;  %v2074_v21 = vld [vmem:[%s3426_s7 + $0x10] sm:$0xff] }
0x2523   :  { %2863 = vtanh.f32 %v1755_v22  ;;  %v2075_v22 = vld [vmem:[%s3426_s7 + $0x18] sm:$0xff] }
0x252d   :  { %v2864_v54 = vpop.eup %2863 }
0x252e   :  { %1759 = vrot.lane.b32.xlu0 %v2864_v54, %s2915_s13  ;;  %v2768_v54 = vpack.c.bf16 %v2075_v22, %v2074_v21 }
0x25a0   :  { %v1760_v24 = vpop.permute.xlu0 %1759 }
0x25a1   :  { %v1762_v25 = vmul.f32 %v1760_v24, %v1757_v23 }
0x25a3   :  { %v1764_v26 = vadd.f32 %v1763_v55, %v1762_v25 }
0x25a5   :  { %1766 = vrot.lane.b32.xlu1 %v1764_v26, %s2915_s13 }
0x2617   :  { %v1767_v27 = vpop.permute.xlu1 %1766 }
0x2618   :  { %2595 = vmatmul.mubr.msk.f32.vlgmr.msra.gmra.mrb[20].mxu1 %vm37_vm0, %v1767_v27  ;;  %v2252_v27 = vld [vmem:[%s3427_s8] ss:$0 sm:$0xff] }
0x2619   :  { %2616 = vmatprep.mubr.msk.f32.mxu1 %vm2910_vm1, %v2911_v8  ;;  %2760 = vmatpush3.bf16.msra.mxu1 %v2759_v5 }
0x261a   :  { %2761 = vmatprep.subr.bf16.mxu1 %v2909_v3 }
0x261d   :  { %2763 = vmatpush3.bf16.msra.mxu1 %v2762_v56 }
0x26eb   :  { %v1836_v28 = vpop.f32.mrb[20].mxu1 }
0x26ec   :  { %v1847_v29 = vadd.f32 %v1836_v28, %v3071_v42  ;;  %v2596_v30 = vpop.f32.mrb[21].mxu1  ;;  %v1840_v32 = vadd.f32 %v1836_v28, %v313_v31 }
0x26ee   :  { %1849 = vrot.lane.b32.xlu0 %v1847_v29, %s2912_s17  ;;  %v2246_v33 = vmul.f32 -1.442695, %v1840_v32 }
0x26f0   :  { %2865 = vpow2.f32 %v2246_v33 }
0x26fa   :  { %v2866_v34 = vpop.eup %2865 }
0x26fb   :  { %v1844_v35 = vadd.f32 1.0, %v2866_v34 }
0x26fd   :  { %2867 = vrcp.f32 %v1844_v35 }
0x2707   :  { %v2868_v36 = vpop.eup %2867 }
0x2708   :  { %v1859_v53 = vsub.f32 1.0, %v2868_v36  ;;  %v1865_v58 = vmul.f32 %v2868_v36, %v1764_v26 }
0x2760   :  { %v1850_v37 = vpop.permute.xlu0 %1849 }
0x2761   :  { %v1852_v39 = vmul.f32 %v2868_v36, %v1850_v37 }
0x2763   :  { %1854 = vrot.lane.b32.xlu1 %v1852_v39, %s2912_s17 }
0x27d5   :  { %v1855_v41 = vpop.permute.xlu1 %1854 }
0x27d6   :  { %v1857_v43 = vadd.f32 %v1855_v41, %v313_v31 }
0x27d8   :  { %2869 = vtanh.f32 %v1857_v43 }
0x27e2   :  { %v2870_v44 = vpop.eup %2869 }
0x27e3   :  { %1861 = vrot.lane.b32.xlu0 %v2870_v44, %s2915_s13 }
0x2855   :  { %v1862_v45 = vpop.permute.xlu0 %1861 }
0x2856   :  { %v1864_v47 = vmul.f32 %v1862_v45, %v1859_v53 }
0x2858   :  { %v1866_v48 = vadd.f32 %v1865_v58, %v1864_v47 }
0x285a   :  { %1868 = vrot.lane.b32.xlu1 %v1866_v48, %s2915_s13 }
0x28cc   :  { %v1869_v49 = vpop.permute.xlu1 %1868 }
0x28cd   :  { %2606 = vmatmul.mubr.msk.f32.vlgmr.msra.gmra.mrb[24].mxu0 %vm37_vm0, %v1869_v49 }
0x28ce   :  { %2627 = vmatprep.mubr.msk.f32.mxu0 %vm2910_vm1, %v2911_v8  ;;  %2766 = vmatpush3.bf16.msra.mxu0 %v2765_v17 }
0x28cf   :  { %2767 = vmatprep.subr.bf16.mxu0 %v2909_v3  ;;  %v2250_v3 = vld [vmem:[%s3425_s6] ss:$0 sm:$0xff]  ;;  %s2916_s6 = smov [#allocation3]  }
0x28d0   :  { %s2175_s7 = sshll.u32 %s2916_s6, 4  ;;  %s2176_s7 = int_to_ptr.vmem [resolvable:$true] %s2175_s7 }
0x28d1   :  { %s2884_s8 = scalar_lea.vmem %s2176_s7, 128  ;;  %p2889_p1 = scmp.lt.s32.totalorder %s2176_s7, %s2176_s7 }
0x28d2   :  { %2769 = vmatpush3.bf16.msra.mxu0 %v2768_v54  ;;  %p2885_p0 = scmp.ne.s32.totalorder %s2176_s7, %s2884_s8  ;;  %p2890_p2 = scmp.lt.s32.totalorder %s2884_s8, %s2884_s8 }
0x28d4   :  { %p2891_p3 = por %p2890_p2, %p2889_p1 }
0x28d6   :  { %p2892_p4 = pnand %p2891_p3, %p2885_p0 }
0x29a0   :  { %v1938_v50 = vpop.f32.mrb[24].mxu0 }
0x29a1   :  { %v1949_v51 = vadd.f32 %v1938_v50, %v3071_v42  ;;  %v2607_v52 = vpop.f32.mrb[25].mxu0  ;;  %v1942_v59 = vadd.f32 %v1938_v50, %v318_v40 }
0x29a3   :  { %1951 = vrot.lane.b32.xlu0 %v1949_v51, %s2912_s17  ;;  %v2248_v60 = vmul.f32 -1.442695, %v1942_v59 }
0x29a5   :  { %2871 = vpow2.f32 %v2248_v60 }
0x29af   :  { %v2872_v61 = vpop.eup %2871 }
0x29b0   :  { %v1946_v62 = vadd.f32 1.0, %v2872_v61 }
0x29b2   :  { %2873 = vrcp.f32 %v1946_v62 }
0x29bc   :  { %v2874_v63 = vpop.eup %2873 }
0x29bd   :  { %v1961_v6 = vsub.f32 1.0, %v2874_v63  ;;  %v1967_v10 = vmul.f32 %v2874_v63, %v1866_v48 }
0x2a15   :  { %v1952_v38 = vpop.permute.xlu0 %1951 }
0x2a16   :  { %v1954_v0 = vmul.f32 %v2874_v63, %v1952_v38 }
0x2a18   :  { %1956 = vrot.lane.b32.xlu1 %v1954_v0, %s2912_s17 }
0x2a8a   :  { %v1957_v8 = vpop.permute.xlu1 %1956 }
0x2a8b   :  { %v1959_v1 = vadd.f32 %v1957_v8, %v318_v40 }
0x2a8d   :  { %2875 = vtanh.f32 %v1959_v1 }
0x2a97   :  { %v2876_v42 = vpop.eup %2875 }
0x2a98   :  { %1963 = vrot.lane.b32.xlu0 %v2876_v42, %s2915_s13 }
0x2b0a   :  { %v1964_v9 = vpop.permute.xlu0 %1963 }
0x2b0b   :  { %v1966_v11 = vmul.f32 %v1964_v9, %v1961_v6 }
0x2b0d   :  { %v1968_v12 = vadd.f32 %v1967_v10, %v1966_v11 }
0x2b0f   :  { %v1978_v14 = vmin.f32 %v1968_v12, 0.0  ;;  %vm1977_vm1 = vcmp.gt.f32.partialorder %v1968_v12, 0.0 }
0x2b11   :  { %v1979_v7 = vmul.f32 1.442695, %v1978_v14 }
0x2b13   :  { %2877 = vpow2.f32 %v1979_v7 }
0x2b1d   :  { %v2878_v18 = vpop.eup %2877 }
0x2b1e   :  { %v2249_v15 = vadd.f32 -1.0, %v2878_v18 }
0x2b20   :  { %v1982_v19 = vsel %vm1977_vm1, %v1968_v12, %v2249_v15 }
0x2b21   :  { %1995 = vrot.lane.b32.xlu1 %v1982_v19, %s2915_s13 }
0x2b93   :  { %v1996_v20 = vpop.permute.xlu1 %1995 }
0x2b94   :  { %2617 = vmatmul.mubr.msk.f32.vlgmr.msra.gmra.mrb[22].mxu1 %vm37_vm0, %v1996_v20 }
0x2c67   :  { %v2065_v23 = vpop.f32.mrb[22].mxu1 }
0x2c68   :  { %v2066_v24 = vadd.f32 %v2250_v3, %v2065_v23  ;;  %v2618_v55 = vpop.f32.mrb[23].mxu1 }
0x2c6a   :  { %vm2069_vm4 = vcmp.gt.f32.partialorder %v2066_v24, 0.0  ;;  %v2070_v25 = vmul.f32 0.01, %v2066_v24 }
0x2c6c   :  { %v2071_v26 = vsel %vm2069_vm4, %v2066_v24, %v2070_v25 }
0x2c6d   :  { %2628 = vmatmul.mubr.msk.f32.vlgmr.msra.gmra.mrb[26].mxu0 %vm37_vm0, %v2071_v26 }
0x2d40   :  { %v2152_v28 = vpop.f32.mrb[26].mxu0 }
0x2d41   :  { %v2153_v29 = vadd.f32 %v2252_v27, %v2152_v28  ;;  %v2629_v30 = vpop.f32.mrb[27].mxu0 }
0x2d43   :  { %v2157_v31 = vsel %vm2156_vm5, %v2153_v29, -inf }
0x2d44   :  { %2158 = vmax.xlane.f32.xlu0 %v2157_v31 }
0x2d5a   :  { %1970 = vrot.lane.b32.xlu0 %v1968_v12, %s2915_s13 }
0x2dd1   :  { %v2159_v32 = vpop.xlane.xlu0 %2158 }
0x2dd2   :  { %v2160_v33 = vsub.f32 %v2153_v29, %v2159_v32 }
0x2dd4   :  { %v2161_v34 = vmul.f32 1.442695, %v2160_v33 }
0x2dd5   :  { %v1971_v35 = vpop.permute.xlu0 %1970 }
0x2dd6   :  { %2879 = vpow2.f32 %v2161_v34  ;;  %1973 = vst.msk [vmem:[#allocation2] sm:$0xff] %vm37_vm0, %v1971_v35 }
0x2de0   :  { %v2880_v36 = vpop.eup %2879 }
0x2de1   :  { %v2163_v37 = vsel %vm2156_vm5, %v2880_v36, 0.0 }
0x2de2   :  { %2164 = vadd.xlane.f32.xlu1 %v2163_v37 }
0x2e6f   :  { %v2165_v39 = vpop.xlane.xlu1 %2164 }
0x2e70   :  { %2881 = vrcp.f32 %v2165_v39 }
0x2e7a   :  { %v2882_v41 = vpop.eup %2881 }
0x2e7b   :  { %v2167_v43 = vmul.f32 %v2882_v41, %v2880_v36 }
0x2e7d   :  { %2168 = vst.msk [vmem:[#allocation3] sm:$0xff] %vm2156_vm5, %v2167_v43 }
0x2e7e   :  { %2895 = shalt.err (!%p2892_p4)
}
0x2e7f   :  { %s2896_s4 = scalar_lea.hbm %s3428_s9, 128 }
0x2e80   :  { %p2897_p5 = scmp.ne.s32.totalorder %s3428_s9, %s2896_s4  ;;  %p2900_p6 = scmp.lt.u32.totalorder %s2896_s4, %s3428_s9 }
0x2e82   :  { %p2902_p7 = pnand %p2900_p6, %p2897_p5 }
0x2e84   :  { %2905 = shalt.err (!%p2902_p7)
}
0x2e85   :  { %2178 = dma.vmem_to_hbm [thread:$0]  %s2176_s7, 128, %s3428_s9, [#allocation4]  }
0x2e86   :  { %2906 = dma.done.wait [#allocation4], 128  }
0x2e87   :  { %2907 = vsyncadd [#allocation4], 4294967168 }
0x2e88   :  { %2182 = vsyncpa [#allocation4], 1 }

</bundles_post_ra>
